<compile_context>
chip_gen: v5e
topology: v5e:2x2
jax: 0.10.0
libtpu: 0.0.40
codegen_flags: <defaults>
</compile_context>

<pallas_src>
import functools

import jax
import jax.numpy as jnp
from jax.experimental import pallas as pl
from jax.experimental.pallas import tpu as pltpu


def _convlstm_kernel(p_ref, c_ref, w_ref, h_out_ref, c_out_ref, *, hidden_dim):
    """One batch element.

    p_ref     : (1, Kp, M)      matmul dtype -- im2col patches (+ ones row, pad)
    c_ref     : (1, hidden, M)  float32      -- current cell state
    w_ref     : (4*hidden, Kp)  matmul dtype -- conv weight (+ bias col, pad)
    h_out_ref : (1, hidden, M)  float32
    c_out_ref : (1, hidden, M)  float32
    """
    # Single MXU matmul with f32 accumulation:
    # (4*hidden, Kp) @ (Kp, M) -> (4*hidden, M).  Bias is already folded in.
    acc = jnp.dot(w_ref[...], p_ref[0], preferred_element_type=jnp.float32)

    hd = hidden_dim
    # Gate rows are sublane-aligned (hd % 8 == 0); every elementwise op below
    # runs at full 128-lane width because M sits on the lane axis.
    i = jax.nn.sigmoid(acc[0 * hd:1 * hd, :])
    f = jax.nn.sigmoid(acc[1 * hd:2 * hd, :])
    o = jax.nn.sigmoid(acc[2 * hd:3 * hd, :])
    g = jnp.tanh(acc[3 * hd:4 * hd, :])

    c_cur = c_ref[0]
    c_next = f * c_cur + i * g
    h_next = o * jnp.tanh(c_next)

    # Lane-dense stores: last dim M is a multiple of 128.
    h_out_ref[0] = h_next.astype(h_out_ref.dtype)
    c_out_ref[0] = c_next.astype(c_out_ref.dtype)


def conv_lstm_cell(x, h, c, weight, bias, *, kernel_size,
                   matmul_dtype=jnp.bfloat16):
    """One ConvLSTMCell step, PyTorch layouts.

    x      : (B, input_dim, H, W)               float32 (NCHW)
    h, c   : (B, hidden_dim, H, W)              float32 (NCHW)
    weight : (4*hidden, input_dim + hidden, KH, KW)  (OIHW, as nn.Conv2d)
    bias   : (4*hidden,)
    returns (h_next, c_next), both (B, hidden_dim, H, W) float32
    """
    B, input_dim, H, W = x.shape
    hidden_dim = h.shape[1]
    KH, KW = kernel_size
    cin = input_dim + hidden_dim
    cout = 4 * hidden_dim
    ph, pw = KH // 2, KW // 2
    M = H * W                        # lane axis (256 here, multiple of 128)
    K = KH * KW * cin                # contraction dim of the fused conv matmul
    Kp = ((K + 1 + 15) // 16) * 16   # + bias row, rounded for bf16 sublanes

    # ---- wrapper-side glue (XLA): concat, pad, im2col unfold, bias fold ----
    combined = jnp.concatenate([x, h], axis=1)                       # (B,cin,H,W)
    padded = jnp.pad(combined, ((0, 0), (0, 0), (ph, ph), (pw, pw)))
    # K ordering is (ky, kx, ci); must match the weight reshape below.
    patches = jnp.concatenate(
        [padded[:, :, ky:ky + H, kx:kx + W]
         for ky in range(KH) for kx in range(KW)], axis=1)           # (B,K,H,W)
    patches = patches.reshape(B, K, M)
    patches = jnp.concatenate(
        [patches,
         jnp.ones((B, 1, M), patches.dtype),                         # bias row
         jnp.zeros((B, Kp - K - 1, M), patches.dtype)], axis=1)      # (B,Kp,M)

    w_t = jnp.transpose(weight, (0, 2, 3, 1)).reshape(cout, K)       # (cout,K)
    w_t = jnp.concatenate(
        [w_t, bias.reshape(cout, 1),
         jnp.zeros((cout, Kp - K - 1), w_t.dtype)], axis=1)          # (cout,Kp)

    patches = patches.astype(matmul_dtype)
    w_t = w_t.astype(matmul_dtype)
    c_flat = c.reshape(B, hidden_dim, M)

    out_sd = jax.ShapeDtypeStruct((B, hidden_dim, M), jnp.float32)
    kernel = functools.partial(_convlstm_kernel, hidden_dim=hidden_dim)

    h_next, c_next = pl.pallas_call(
        kernel,
        out_shape=(out_sd, out_sd),
        grid_spec=pltpu.PrefetchScalarGridSpec(
            num_scalar_prefetch=0,
            grid=(B,),
            in_specs=[
                pl.BlockSpec((1, Kp, M), lambda b: (b, 0, 0)),
                pl.BlockSpec((1, hidden_dim, M), lambda b: (b, 0, 0)),
                pl.BlockSpec((cout, Kp), lambda b: (0, 0)),
            ],
            out_specs=[
                pl.BlockSpec((1, hidden_dim, M), lambda b: (b, 0, 0)),
                pl.BlockSpec((1, hidden_dim, M), lambda b: (b, 0, 0)),
            ],
        ),
        compiler_params=pltpu.CompilerParams(
            dimension_semantics=("parallel",)),
    )(patches, c_flat, w_t)

    return (h_next.reshape(B, hidden_dim, H, W),
            c_next.reshape(B, hidden_dim, H, W))


def _reference(x, h, c, weight, bias):
    """Pure-JAX reference (matches PyTorch ConvLSTMCell.forward, f32)."""
    combined = jnp.concatenate([x, h], axis=1)
    conv = jax.lax.conv_general_dilated(
        combined, weight, window_strides=(1, 1), padding="SAME",
        dimension_numbers=("NCHW", "OIHW", "NCHW"))
    conv = conv + bias.reshape(1, -1, 1, 1)
    cc_i, cc_f, cc_o, cc_g = jnp.split(conv, 4, axis=1)
    i = jax.nn.sigmoid(cc_i)
    f = jax.nn.sigmoid(cc_f)
    o = jax.nn.sigmoid(cc_o)
    g = jnp.tanh(cc_g)
    c_next = f * c + i * g
    h_next = o * jnp.tanh(c_next)
    return h_next, c_next


if __name__ == "__main__":
    # Module config: input_size=(16,16), input_dim=4, hidden_dim=32,
    # kernel_size=(3,3), bias=True
    B, H, W = 2, 16, 16
    input_dim, hidden_dim = 4, 32
    kernel_size = (3, 3)
    KH, KW = kernel_size
    cin = input_dim + hidden_dim
    cout = 4 * hidden_dim

    key = jax.random.PRNGKey(0)
    kx, kh, kc, kw_, kb = jax.random.split(key, 5)

    # deterministic synthetic parameters (Conv2d: out=4*hidden, in=input+hidden)
    weight = jax.random.normal(kw_, (cout, cin, KH, KW), jnp.float32) * 0.05
    bias = jax.random.normal(kb, (cout,), jnp.float32) * 0.05

    # inputs in PyTorch NCHW layout (kernel consumes NCHW directly)
    x = jax.random.normal(kx, (B, input_dim, H, W), jnp.float32)
    h = jax.random.normal(kh, (B, hidden_dim, H, W), jnp.float32)
    c = jax.random.normal(kc, (B, hidden_dim, H, W), jnp.float32)

    h_next, c_next = conv_lstm_cell(x, h, c, weight, bias,
                                    kernel_size=kernel_size)
    jax.block_until_ready((h_next, c_next))

    # sanity check against pure-f32 JAX reference.  The kernel uses bf16 MXU
    # operands (f32 accumulation), hence the slightly looser tolerance.
    h_ref, c_ref = _reference(x, h, c, weight, bias)
    assert jnp.allclose(h_next, h_ref, atol=2e-2, rtol=2e-2)
    assert jnp.allclose(c_next, c_ref, atol=2e-2, rtol=2e-2)

    print("KERNEL_OK")
</pallas_src>

<mosaic_0001>
module attributes {stable_mosaic.version = 11 : i64} {
  func.func @_convlstm_kernel(%arg0: i32, %arg1: memref<1x336x256xbf16, #tpu.memory_space<vmem>>, %arg2: memref<1x32x256xf32, #tpu.memory_space<vmem>>, %arg3: memref<128x336xbf16, #tpu.memory_space<vmem>>, %arg4: memref<1x32x256xf32, #tpu.memory_space<vmem>>, %arg5: memref<1x32x256xf32, #tpu.memory_space<vmem>>) attributes {dimension_semantics = [#tpu.dimension_semantics<parallel>], iteration_bounds = array<i64: 2>, scalar_prefetch = 0 : i64, scratch_operands = 0 : i64, tpu.core_type = #tpu.core_type<tc>, window_params = [{transform_indices = @transform_0, window_bounds = array<i64: 1, 336, 256>}, {transform_indices = @transform_1, window_bounds = array<i64: 1, 32, 256>}, {pipeline_mode = #tpu.pipeline_mode<synchronous>, transform_indices = @transform_2, window_bounds = array<i64: 128, 336>}, {transform_indices = @transform_3, window_bounds = array<i64: 1, 32, 256>}, {transform_indices = @transform_4, window_bounds = array<i64: 1, 32, 256>}]} {
    %c0 = arith.constant 0 : index
    %c0_0 = arith.constant 0 : index
    %0 = vector.load %arg3[%c0, %c0_0] : memref<128x336xbf16, #tpu.memory_space<vmem>>, vector<128x336xbf16>
    %c0_1 = arith.constant 0 : index
    %c0_2 = arith.constant 0 : index
    %c0_3 = arith.constant 0 : index
    %1 = vector.load %arg1[%c0_1, %c0_2, %c0_3] : memref<1x336x256xbf16, #tpu.memory_space<vmem>>, vector<1x336x256xbf16>
    %2 = vector.shape_cast %1 : vector<1x336x256xbf16> to vector<336x256xbf16>
    %cst = arith.constant dense<0.000000e+00> : vector<128x256xf32>
    %3 = tpu.matmul %0, %2, %cst {dimension_numbers = #tpu.dot_dimension_numbers<[1], [0], [0], [1], [0, 0, 1, 1], [], []>} : vector<128x336xbf16>, vector<336x256xbf16>, vector<128x256xf32> -> vector<128x256xf32>
    %4 = vector.extract_strided_slice %3 {offsets = [0, 0], sizes = [32, 256], strides = [1, 1]} : vector<128x256xf32> to vector<32x256xf32>
    %5 = arith.negf %4 : vector<32x256xf32>
    %6 = math.exp %5 : vector<32x256xf32>
    %cst_4 = arith.constant 1.000000e+00 : f32
    %7 = vector.broadcast %cst_4 : f32 to vector<32x256xf32>
    %8 = arith.addf %7, %6 : vector<32x256xf32>
    %9 = arith.divf %7, %8 : vector<32x256xf32>
    %10 = vector.extract_strided_slice %3 {offsets = [32, 0], sizes = [32, 256], strides = [1, 1]} : vector<128x256xf32> to vector<32x256xf32>
    %11 = arith.negf %10 : vector<32x256xf32>
    %12 = math.exp %11 : vector<32x256xf32>
    %cst_5 = arith.constant 1.000000e+00 : f32
    %13 = vector.broadcast %cst_5 : f32 to vector<32x256xf32>
    %14 = arith.addf %13, %12 : vector<32x256xf32>
    %15 = arith.divf %13, %14 : vector<32x256xf32>
    %16 = vector.extract_strided_slice %3 {offsets = [64, 0], sizes = [32, 256], strides = [1, 1]} : vector<128x256xf32> to vector<32x256xf32>
    %17 = arith.negf %16 : vector<32x256xf32>
    %18 = math.exp %17 : vector<32x256xf32>
    %cst_6 = arith.constant 1.000000e+00 : f32
    %19 = vector.broadcast %cst_6 : f32 to vector<32x256xf32>
    %20 = arith.addf %19, %18 : vector<32x256xf32>
    %21 = arith.divf %19, %20 : vector<32x256xf32>
    %22 = vector.extract_strided_slice %3 {offsets = [96, 0], sizes = [32, 256], strides = [1, 1]} : vector<128x256xf32> to vector<32x256xf32>
    %23 = math.tanh %22 : vector<32x256xf32>
    %c0_7 = arith.constant 0 : index
    %c0_8 = arith.constant 0 : index
    %c0_9 = arith.constant 0 : index
    %24 = vector.load %arg2[%c0_7, %c0_8, %c0_9] : memref<1x32x256xf32, #tpu.memory_space<vmem>>, vector<1x32x256xf32>
    %25 = vector.shape_cast %24 : vector<1x32x256xf32> to vector<32x256xf32>
    %26 = arith.mulf %15, %25 : vector<32x256xf32>
    %27 = arith.mulf %9, %23 : vector<32x256xf32>
    %28 = arith.addf %26, %27 : vector<32x256xf32>
    %29 = math.tanh %28 : vector<32x256xf32>
    %30 = arith.mulf %21, %29 : vector<32x256xf32>
    %c0_10 = arith.constant 0 : index
    %c0_11 = arith.constant 0 : index
    %c0_12 = arith.constant 0 : index
    %31 = vector.load %arg4[%c0_10, %c0_11, %c0_12] : memref<1x32x256xf32, #tpu.memory_space<vmem>>, vector<1x32x256xf32>
    %32 = vector.shape_cast %31 : vector<1x32x256xf32> to vector<32x256xf32>
    %33 = vector.shape_cast %30 : vector<32x256xf32> to vector<1x32x256xf32>
    tpu.vector_store %arg4[%c0_10, %c0_11, %c0_12], %33 {strides = array<i32>} : memref<1x32x256xf32, #tpu.memory_space<vmem>>, vector<1x32x256xf32>,
    %c0_13 = arith.constant 0 : index
    %c0_14 = arith.constant 0 : index
    %c0_15 = arith.constant 0 : index
    %34 = vector.load %arg5[%c0_13, %c0_14, %c0_15] : memref<1x32x256xf32, #tpu.memory_space<vmem>>, vector<1x32x256xf32>
    %35 = vector.shape_cast %34 : vector<1x32x256xf32> to vector<32x256xf32>
    %36 = vector.shape_cast %28 : vector<32x256xf32> to vector<1x32x256xf32>
    tpu.vector_store %arg5[%c0_13, %c0_14, %c0_15], %36 {strides = array<i32>} : memref<1x32x256xf32, #tpu.memory_space<vmem>>, vector<1x32x256xf32>,
    return
  }
  func.func @transform_0(%arg0: i32) -> (i32, i32, i32) {
    %c0_i32 = arith.constant 0 : i32
    %c0_i32_0 = arith.constant 0 : i32
    %c0_i32_1 = arith.constant 0 : i32
    return %arg0, %c0_i32, %c0_i32_0 : i32, i32, i32
  }
  func.func @transform_1(%arg0: i32) -> (i32, i32, i32) {
    %c0_i32 = arith.constant 0 : i32
    %c0_i32_0 = arith.constant 0 : i32
    %c0_i32_1 = arith.constant 0 : i32
    return %arg0, %c0_i32, %c0_i32_0 : i32, i32, i32
  }
  func.func @transform_2(%arg0: i32) -> (i32, i32) {
    %c0_i32 = arith.constant 0 : i32
    %c0_i32_0 = arith.constant 0 : i32
    %c0_i32_1 = arith.constant 0 : i32
    return %c0_i32, %c0_i32_0 : i32, i32
  }
  func.func @transform_3(%arg0: i32) -> (i32, i32, i32) {
    %c0_i32 = arith.constant 0 : i32
    %c0_i32_0 = arith.constant 0 : i32
    %c0_i32_1 = arith.constant 0 : i32
    return %arg0, %c0_i32, %c0_i32_0 : i32, i32, i32
  }
  func.func @transform_4(%arg0: i32) -> (i32, i32, i32) {
    %c0_i32 = arith.constant 0 : i32
    %c0_i32_0 = arith.constant 0 : i32
    %c0_i32_1 = arith.constant 0 : i32
    return %arg0, %c0_i32, %c0_i32_0 : i32, i32, i32
  }
}

</mosaic_0001>

<bundles_post_ra>
// kernel: tpu_custom_call.1
= control target key start
LH: loop header
LB: loop body
LE: loop exit
PB: predicated region body
PF: predicated region fallthrough
CT: control target
= control target key end

     0   :  { %10 = vsyncpa [#allocation3], 0  ;;  %s3801_s0 = inlined_call_operand.hbm [shape: bf16[2,336,256], index: 0, kind: input, shape index: {}]   ;;  %s3802_s1 = inlined_call_operand.vmem [shape: f32[2,32,256], index: 1, kind: input, shape index: {}]   ;;  %s3803_s2 = inlined_call_operand.vmem [shape: bf16[128,336], index: 2, kind: input, shape index: {}]   ;;  %s3804_s3 = inlined_call_operand.hbm [shape: f32[2,32,256], index: 3, kind: output, shape index: {0}]   ;;  %s3805_s4 = inlined_call_operand.hbm [shape: f32[2,32,256], index: 4, kind: output, shape index: {1}]  }
   0x1   :  { %12 = vsyncpa [#allocation3 + $0x1], 0 }
   0x2   :  { %13 = vsyncpa [#allocation4], 0 }
   0x3   :  { %15 = vsyncpa [#allocation4 + $0x1], 0 }
   0x4   :  { %16 = vsyncpa [#allocation7], 0 }
   0x5   :  { %18 = vsyncpa [#allocation7 + $0x1], 0  ;;  %s2405_s15 = smov 0   ;;  %s2407_s16 = smov 0  }
   0x6   :  { %s2409_s17 = smov 0   ;;  %s2411_s18 = smov 0  }
   0x7 LB: > { %s2426_s19 = sadd.s32 4294967295, %s2374_s18   ;;  %s1657_s20 = sadd.s32 4294967294, %s2374_s18   ;;  %s2374_s18 = sphi %s2411_s18, %s3916_s18   ;;  %s2370_s17 = sphi %s2409_s17, %s3915_s17   ;;  %s2366_s16 = sphi %s2407_s16, %s3914_s16   ;;  %s2362_s15 = sphi %s2405_s15, %s3913_s15  }
   0x8   : > { %s2430_s21 = sadd.s32 1, %s2374_s18   ;;  %s31_s22 = sadd.s32 1, %s2370_s17 }
   0x9   : > { %s28_s23 = ssub.s32 %s2374_s18, %s2430_s21  ;;  %p38_p0 = scmp.ne.s32.totalorder %s2370_s17, %s2366_s16 }
   0xa   : > { %p29_p1 = scmp.eq.s32.totalorder %s28_s23, 0  ;;  %p39_p2 = scmp.eq.s32.totalorder %s2374_s18, 0 }
   0xb   : > { %p44_p3 = scmp.ne.s32.totalorder %s2366_s16, %s2362_s15  ;;  %p45_p4 = scmp.eq.s32.totalorder %s2426_s19, 0 }
   0xc   : > { %s2442_s24 = scalar_select %p29_p1, %s2370_s17, %s31_s22  }
   0xd   : > { %p40_p5 = por %p39_p2, %p38_p0  ;;  %p2444_p6 = por %p45_p4, %p44_p3 }
   0xe   : > { %p115_p7 = scmp.eq.s32.totalorder %s2426_s19, 1  ;;  %p121_p8 = scmp.eq.s32.totalorder %s1657_s20, 1 }
   0xf   : > { %p1659_p9 = scmp.ge.s32.totalorder %s2374_s18, 2  ;;  %p2080_p10 = scmp.lt.s32.totalorder %s2374_s18, 2 }
  0x10   : > { %p2451_p11 = por %p115_p7, %p38_p0  ;;  %p2455_p12 = por %p121_p8, %p44_p3 }
  0x11   : > { %s170_s28 = sand.u32 1, %s2370_s17   ;;  %s2061_s29 = smul.u32 336, %s2374_s18 }
  0x12   : > { %s2060_s30 = smul.u32 336, %s170_s28  ;;  %p2464_p13 = pnand %p2080_p10, %p40_p5 }
  0x13   : > { %s179_s7 = scalar_lea.hbm %s3801_s0, %s2061_s29  ;;  %s171_s12 = scalar_lea.sflag [#allocation3], %s170_s28 }
  0x14   : > { %s180_s9 = sshll.u32 %s179_s7, 4  ;;  %s174_s10 = scalar_lea.vmem [#allocation2], %s2060_s30  ;;  %s181_s9 = int_to_ptr.hbm [resolvable:$true] %s180_s9 }
  0x15   : > { %s182_s11 = sshll.u32 %s174_s10, 4  ;;  %s2246_s13 = sshra.s32 %s181_s9, 4  ;;  %s183_s11 = int_to_ptr.vmem [resolvable:$true] %s182_s11  ;;  %s2247_s13 = int_to_ptr.hbm [resolvable:$true] %s2246_s13 }
  0x16   : > { %s2248_s14 = scalar_lea.hbm %s2247_s13, 336  ;;  %p2250_p1 = pneg %p2464_p13 }
  0x17   : > { %p2249_p0 = scmp.ne.s32.totalorder %s2247_s13, %s2248_s14  ;;  %s2253_s23 = scalar_lea.hbm %s3801_s0, 672 }
  0x18   : > { %p2254_p4 = scmp.lt.s32.totalorder %s2247_s13, %s3801_s0  ;;  %p2255_p5 = scmp.lt.s32.totalorder %s2253_s23, %s2248_s14 }
  0x19   : > { %p2251_p2 = pnand %p2250_p1, %p2249_p0 }
  0x1a   : > { %p2256_p7 = por %p2255_p5, %p2254_p4 }
  0x1b   : > { %p2252_p3 = pneg %p2251_p2 }
  0x1d   : > { %p2257_p8 = pnand %p2256_p7, %p2252_p3 }
  0x1f   : > { %2260 = shalt.err (!%p2257_p8)
}
  0x20   : > { %s2376_s28 = smov 128   ;;  %s2377_s30 = smov 8  }
  0x21   : > { %2072 = dma.hbm_to_vmem [thread:$0]  (!%p2464_p13), %s181_s9, 5376, %s183_s11, %s171_s12, %s2376_s28, %s2376_s28, %s2377_s30  }
  0x22   : > { %p1661_p10 = scmp.ge.s32.totalorder %s2374_s18, 1  ;;  %p198_p0 = scmp.lt.s32.totalorder %s2374_s18, 3 }
  0x24   : > { %p199_p1 = pnand %p1661_p10, %p198_p0 }
  0x26   : > { %202 = sbr.rel (%p199_p1) target bundleno = 441 (0x1b9), region = 32 }
  0x2b   : > { %s2481_s6 = sand.u32 1, %s2366_s16  }
  0x2c   : > { %s2062_s7 = smul.u32 336, %s2481_s6  ;;  %s205_s10 = scalar_lea.sflag [#allocation3], %s2481_s6 }
  0x2e   : > { %s2485_s13 = scalar_lea.vmem [#allocation2], %s2062_s7 }
  0x2f   : > { %2349 = dma.done.wait (%p2444_p6), %s205_s10, 5376  }
  0x30   : > { %2351 = vsyncadd (%p2444_p6), %s205_s10, 4294961920  ;;  %v1820_v0 = vld [vmem:[%s2485_s13 + $0x70] sm:$0xf]  ;;  %v2018_v1 = vld [vmem:[%s2485_s13 + $0x74] sm:$0xf0]  ;;  %vm654_vm0 = vcmask 654336  }
  0x31   : > { %v1924_v2 = vld [vmem:[%s2485_s13 + $0x140] sm:$0xf]  ;;  %v1821_v3 = vor.u32 %v2018_v1, %v1820_v0  ;;  %v2044_v4 = vld [vmem:[%s2485_s13 + $0x144] sm:$0xf0]  ;;  %v1916_v8 = vld [vmem:[%s2485_s13 + $0x130] sm:$0xf] }
  0x32   : > { %v1812_v5 = vld [vmem:[%s2485_s13 + $0x60] sm:$0xf]  ;;  %v2016_v6 = vld [vmem:[%s2485_s13 + $0x64] sm:$0xf0]  ;;  %v1925_v7 = vor.u32 %v2044_v4, %v1924_v2  ;;  %v2042_v9 = vld [vmem:[%s2485_s13 + $0x134] sm:$0xf0] }
  0x33   : > { %2047 = vmatpush.bf16.msra.mxu1 %v1821_v3  ;;  %679 = vmatpush.bf16.msra.mxu0 %v1821_v3  ;;  %v1813_v10 = vor.u32 %v2016_v6, %v1812_v5  ;;  %v1917_v11 = vor.u32 %v2042_v9, %v1916_v8  ;;  %v1804_v12 = vld [vmem:[%s2485_s13 + $0x50] sm:$0xf]  ;;  %v2014_v13 = vld [vmem:[%s2485_s13 + $0x54] sm:$0xf0]  ;;  %v1908_v14 = vld [vmem:[%s2485_s13 + $0x120] sm:$0xf] }
  0x34   : > { %780 = vmatpush.bf16.msra.mxu2 %v1925_v7  ;;  %2055 = vmatpush.bf16.msra.mxu3 %v1925_v7  ;;  %v2040_v15 = vld [vmem:[%s2485_s13 + $0x124] sm:$0xf0]  ;;  %v1805_v16 = vor.u32 %v2014_v13, %v1804_v12  ;;  %v1796_v18 = vld [vmem:[%s2485_s13 + $0x40] sm:$0xf]  ;;  %v1900_v20 = vld [vmem:[%s2485_s13 + $0x110] sm:$0xf] }
  0x35   : > { %v1909_v17 = vor.u32 %v2040_v15, %v1908_v14  ;;  %v2012_v19 = vld [vmem:[%s2485_s13 + $0x44] sm:$0xf0]  ;;  %v2038_v21 = vld [vmem:[%s2485_s13 + $0x114] sm:$0xf0]  ;;  %v1788_v24 = vld [vmem:[%s2485_s13 + $0x30] sm:$0xf] }
  0x36   : > { %v1797_v22 = vor.u32 %v2012_v19, %v1796_v18  ;;  %v1901_v23 = vor.u32 %v2038_v21, %v1900_v20  ;;  %v2010_v25 = vld [vmem:[%s2485_s13 + $0x34] sm:$0xf0]  ;;  %v1892_v26 = vld [vmem:[%s2485_s13 + $0x100] sm:$0xf]  ;;  %v2036_v27 = vld [vmem:[%s2485_s13 + $0x104] sm:$0xf0] }
  0x37   : > { %2048 = vmatpush.bf16.msra.mxu1 %v1813_v10  ;;  %680 = vmatpush.bf16.msra.mxu0 %v1813_v10  ;;  %v2033_v28 = vld [vmem:[%s2485_s13 + $0xf4] sm:$0xf]  ;;  %v1886_v29 = vld [vmem:[%s2485_s13 + $0xf8] sm:$0xf0]  ;;  %v1789_v30 = vor.u32 %v2010_v25, %v1788_v24  ;;  %v1676_v31 = vld [vmem:[%s3803_s2 + $0x8] sm:$0xf]  ;;  %v1893_v32 = vor.u32 %v2036_v27, %v1892_v26 }
  0x38   : > { %781 = vmatpush.bf16.msra.mxu2 %v1917_v11  ;;  %2056 = vmatpush.bf16.msra.mxu3 %v1917_v11  ;;  %v1981_v33 = vld [vmem:[%s3803_s2 + $0x10] sm:$0xf0]  ;;  %v1780_v34 = vld [vmem:[%s2485_s13 + $0x20] sm:$0xf]  ;;  %v2008_v35 = vld [vmem:[%s2485_s13 + $0x24] sm:$0xf0]  ;;  %v1889_v36 = vor.u32 %v2033_v28, %v1886_v29 }
  0x39   : > { %v1736_v37 = vld [vmem:[%s3803_s2 + $0x80] sm:$0xf]  ;;  %v1996_v38 = vld [vmem:[%s3803_s2 + $0x88] sm:$0xf0]  ;;  %v2031_v39 = vld [vmem:[%s2485_s13 + $0xe4] sm:$0xf]  ;;  %v2529_v41 = vor.u32 %v1981_v33, %v1676_v31  ;;  %v1781_v42 = vor.u32 %v2008_v35, %v1780_v34 }
  0x3a   : > { %v1878_v40 = vld [vmem:[%s2485_s13 + $0xe8] sm:$0xf0]  ;;  %v1772_v43 = vld [vmem:[%s2485_s13 + $0x10] sm:$0xf]  ;;  %v2006_v44 = vld [vmem:[%s2485_s13 + $0x14] sm:$0xf0]  ;;  %v2533_v45 = vor.u32 %v1996_v38, %v1736_v37 }
  0x3b   : > { %2049 = vmatpush.bf16.msra.mxu1 %v1805_v16  ;;  %681 = vmatpush.bf16.msra.mxu0 %v1805_v16  ;;  %v1881_v46 = vor.u32 %v2031_v39, %v1878_v40  ;;  %v2029_v47 = vld [vmem:[%s2485_s13 + $0xd4] sm:$0xf]  ;;  %v1870_v48 = vld [vmem:[%s2485_s13 + $0xd8] sm:$0xf0]  ;;  %v1773_v49 = vor.u32 %v2006_v44, %v1772_v43  ;;  %v1764_v50 = vld [vmem:[%s2485_s13] sm:$0xf] }
  0x3c   : > { %782 = vmatpush.bf16.msra.mxu2 %v1909_v17  ;;  %2057 = vmatpush.bf16.msra.mxu3 %v1909_v17  ;;  %v2017_v51 = vld [vmem:[%s2485_s13 + $0x74] sm:$0xf]  ;;  %v1822_v52 = vld [vmem:[%s2485_s13 + $0x78] sm:$0xf0]  ;;  %v2004_v53 = vld [vmem:[%s2485_s13 + $0x4] sm:$0xf0]  ;;  %v1873_v57 = vor.u32 %v2029_v47, %v1870_v48 }
  0x3d   : > { %v1884_v54 = vld [vmem:[%s2485_s13 + $0xf0] sm:$0xf]  ;;  %v2034_v55 = vld [vmem:[%s2485_s13 + $0xf4] sm:$0xf0]  ;;  %v1825_v56 = vor.u32 %v2017_v51, %v1822_v52  ;;  %v2043_v58 = vld [vmem:[%s2485_s13 + $0x144] sm:$0xf]  ;;  %v1765_v1 = vor.u32 %v2004_v53, %v1764_v50 }
  0x3e   : > { %v2015_v59 = vld [vmem:[%s2485_s13 + $0x64] sm:$0xf]  ;;  %v1814_v60 = vld [vmem:[%s2485_s13 + $0x68] sm:$0xf0]  ;;  %v1716_v2 = vld [vmem:[%s3803_s2 + $0x60] sm:$0xf]  ;;  %v1885_v6 = vor.u32 %v2034_v55, %v1884_v54 }
  0x3f   : > { %2050 = vmatpush.bf16.msra.mxu1 %v1797_v22  ;;  %682 = vmatpush.bf16.msra.mxu0 %v1797_v22  ;;  %v1926_v61 = vld [vmem:[%s2485_s13 + $0x148] sm:$0xf0]  ;;  %v2027_v62 = vld [vmem:[%s2485_s13 + $0xc4] sm:$0xf]  ;;  %v1817_v0 = vor.u32 %v2015_v59, %v1814_v60  ;;  %v1668_v4 = vld [vmem:[%s3803_s2] sm:$0xf] }
  0x40   : > { %783 = vmatpush.bf16.msra.mxu2 %v1901_v23  ;;  %2058 = vmatpush.bf16.msra.mxu3 %v1901_v23  ;;  %v1862_v63 = vld [vmem:[%s2485_s13 + $0xc8] sm:$0xf0]  ;;  %v1929_v7 = vor.u32 %v2043_v58, %v1926_v61  ;;  %v1876_v8 = vld [vmem:[%s2485_s13 + $0xe0] sm:$0xf]  ;;  %v2032_v9 = vld [vmem:[%s2485_s13 + $0xe4] sm:$0xf0] }
  0x41   : > { %v1992_v3 = vld [vmem:[%s3803_s2 + $0x68] sm:$0xf0]  ;;  %v1865_v10 = vor.u32 %v2027_v62, %v1862_v63  ;;  %v2041_v11 = vld [vmem:[%s2485_s13 + $0x134] sm:$0xf]  ;;  %v1688_v17 = vld [vmem:[%s3803_s2 + $0x20] sm:$0xf]  ;;  %v1877_v19 = vor.u32 %v2032_v9, %v1876_v8 }
  0x42   : > { %v1980_v5 = vld [vmem:[%s3803_s2 + $0x8] sm:$0xf0]  ;;  %v2568_v12 = vor.u32 %v1992_v3, %v1716_v2  ;;  %v2025_v14 = vld [vmem:[%s2485_s13 + $0xb4] sm:$0xf]  ;;  %v1868_v20 = vld [vmem:[%s2485_s13 + $0xd0] sm:$0xf] }
  0x43   : > { %2051 = vmatpush.bf16.msra.mxu1 %v1789_v30  ;;  %683 = vmatpush.bf16.msra.mxu0 %v1789_v30  ;;  %v1918_v13 = vld [vmem:[%s2485_s13 + $0x138] sm:$0xf0]  ;;  %v2573_v16 = vor.u32 %v1980_v5, %v1668_v4  ;;  %v2030_v22 = vld [vmem:[%s2485_s13 + $0xd4] sm:$0xf0]  ;;  %v1999_v24 = vld [vmem:[%s3803_s2 + $0xa0] sm:$0xf0] }
  0x44   : > { %784 = vmatpush.bf16.msra.mxu2 %v1893_v32  ;;  %2059 = vmatpush.bf16.msra.mxu3 %v1893_v32  ;;  %v1854_v15 = vld [vmem:[%s2485_s13 + $0xb8] sm:$0xf0]  ;;  %v1921_v21 = vor.u32 %v2041_v11, %v1918_v13  ;;  %v1748_v23 = vld [vmem:[%s3803_s2 + $0x98] sm:$0xf]  ;;  %v2013_v26 = vld [vmem:[%s2485_s13 + $0x54] sm:$0xf]  ;;  %v1869_v30 = vor.u32 %v2030_v22, %v1868_v20 }
  0x45   : > { %v1984_v18 = vld [vmem:[%s3803_s2 + $0x28] sm:$0xf0]  ;;  %v1857_v25 = vor.u32 %v2025_v14, %v1854_v15  ;;  %v2595_v31 = vor.u32 %v1999_v24, %v1748_v23  ;;  %v1860_v32 = vld [vmem:[%s2485_s13 + $0xc0] sm:$0xf]  ;;  %v2028_v33 = vld [vmem:[%s2485_s13 + $0xc4] sm:$0xf0] }
  0x46   : > { %v1806_v27 = vld [vmem:[%s2485_s13 + $0x58] sm:$0xf0]  ;;  %v2593_v28 = vor.u32 %v1984_v18, %v1688_v17  ;;  %v2011_v34 = vld [vmem:[%s2485_s13 + $0x44] sm:$0xf]  ;;  %v1798_v35 = vld [vmem:[%s2485_s13 + $0x48] sm:$0xf0]  ;;  %v1861_v37 = vor.u32 %v2028_v33, %v1860_v32 }
  0x47   : > { %1930 = vmatmul.msk.bf16.vlgmr.msra.gmra.mxu2 %vm654_vm0, %v2529_v41  ;;  %2052 = vmatpush.bf16.msra.mxu1 %v1781_v42  ;;  %v1809_v29 = vor.u32 %v2013_v26, %v1806_v27  ;;  %v1801_v38 = vor.u32 %v2011_v34, %v1798_v35  ;;  %v1846_v39 = vld [vmem:[%s2485_s13 + $0xa8] sm:$0xf0]  ;;  %v2039_v40 = vld [vmem:[%s2485_s13 + $0x124] sm:$0xf]  ;;  %v2026_v47 = vld [vmem:[%s2485_s13 + $0xb4] sm:$0xf0] }
  0x48   : > { %875 = vmatpush.bf16.msrb.mxu2 %v1889_v36  ;;  %684 = vmatpush.bf16.msra.mxu0 %v1781_v42  ;;  %v2023_v36 = vld [vmem:[%s2485_s13 + $0xa4] sm:$0xf]  ;;  %v1910_v42 = vld [vmem:[%s2485_s13 + $0x128] sm:$0xf0]  ;;  %v2009_v48 = vld [vmem:[%s2485_s13 + $0x34] sm:$0xf] }
  0x49   : > { %1935 = vmatmul.msk.bf16.vlgmr.msra.gmra.mxu3 %vm654_vm0, %v2533_v45  ;;  %v1849_v43 = vor.u32 %v2023_v36, %v1846_v39  ;;  %v1913_v44 = vor.u32 %v2039_v40, %v1910_v42  ;;  %v1728_v50 = vld [vmem:[%s3803_s2 + $0x78] sm:$0xf]  ;;  %v1995_v51 = vld [vmem:[%s3803_s2 + $0x80] sm:$0xf0]  ;;  %v1760_v60 = vld [vmem:[%s3803_s2 + $0xb0] sm:$0xf] }
  0x4a   : > { %826 = vmatpush.bf16.msrb.mxu3 %v1825_v56  ;;  %v1680_v53 = vld [vmem:[%s3803_s2 + $0x18] sm:$0xf]  ;;  %v1983_v54 = vld [vmem:[%s3803_s2 + $0x20] sm:$0xf0]  ;;  %v2625_v56 = vor.u32 %v1995_v51, %v1728_v50  ;;  %v2002_v61 = vld [vmem:[%s3803_s2 + $0xb8] sm:$0xf0] }
  0x4b   : > { %2053 = vmatpush.bf16.msra.mxu1 %v1773_v49  ;;  %v1700_v58 = vld [vmem:[%s3803_s2 + $0x38] sm:$0xf]  ;;  %v1987_v59 = vld [vmem:[%s3803_s2 + $0x40] sm:$0xf0]  ;;  %v1782_v63 = vld [vmem:[%s2485_s13 + $0x28] sm:$0xf0]  ;;  %v2653_v9 = vor.u32 %v2002_v61, %v1760_v60 }
  0x4c   : > { %876 = vmatpush.bf16.msrb.mxu2 %v1881_v46  ;;  %685 = vmatpush.bf16.msra.mxu0 %v1773_v49  ;;  %v1852_v46 = vld [vmem:[%s2485_s13 + $0xb0] sm:$0xf]  ;;  %v1790_v49 = vld [vmem:[%s2485_s13 + $0x38] sm:$0xf0]  ;;  %v2007_v62 = vld [vmem:[%s2485_s13 + $0x24] sm:$0xf]  ;;  %v2648_v4 = vor.u32 %v1987_v59, %v1700_v58 }
  0x4d   : > { %v1793_v52 = vor.u32 %v2009_v48, %v1790_v49  ;;  %v1853_v55 = vor.u32 %v2026_v47, %v1852_v46  ;;  %v1785_v2 = vor.u32 %v2007_v62, %v1782_v63  ;;  %v1844_v3 = vld [vmem:[%s2485_s13 + $0xa0] sm:$0xf]  ;;  %v1902_v8 = vld [vmem:[%s2485_s13 + $0x118] sm:$0xf0]  ;;  %v2005_v13 = vld [vmem:[%s2485_s13 + $0x14] sm:$0xf] }
  0x4e   : > { %827 = vmatpush.bf16.msrb.mxu3 %v1817_v0  ;;  %v2021_v0 = vld [vmem:[%s2485_s13 + $0x94] sm:$0xf]  ;;  %v1774_v14 = vld [vmem:[%s2485_s13 + $0x18] sm:$0xf0]  ;;  %v1836_v17 = vld [vmem:[%s2485_s13 + $0x90] sm:$0xf] }
  0x4f   : > { %2054 = vmatpush.bf16.msra.mxu1 %v1765_v1  ;;  %v1777_v15 = vor.u32 %v2005_v13, %v1774_v14  ;;  %v2022_v18 = vld [vmem:[%s2485_s13 + $0x94] sm:$0xf0]  ;;  %v2019_v22 = vld [vmem:[%s2485_s13 + $0x84] sm:$0xf]  ;;  %v1830_v23 = vld [vmem:[%s2485_s13 + $0x88] sm:$0xf0] }
  0x50   : > { %877 = vmatpush.bf16.msrb.mxu2 %v1873_v57  ;;  %686 = vmatpush.bf16.msra.mxu0 %v1765_v1  ;;  %v2627_v57 = vor.u32 %v1983_v54, %v1680_v53  ;;  %v1838_v1 = vld [vmem:[%s2485_s13 + $0x98] sm:$0xf0]  ;;  %v1837_v20 = vor.u32 %v2022_v18, %v1836_v17  ;;  %v1828_v26 = vld [vmem:[%s2485_s13 + $0x80] sm:$0xf]  ;;  %v2020_v27 = vld [vmem:[%s2485_s13 + $0x84] sm:$0xf0] }
  0x51   : > { %v1841_v5 = vor.u32 %v2021_v0, %v1838_v1  ;;  %v1998_v32 = vld [vmem:[%s3803_s2 + $0x98] sm:$0xf0]  ;;  %v1692_v33 = vld [vmem:[%s3803_s2 + $0x30] sm:$0xf]  ;;  %v2035_v39 = vld [vmem:[%s2485_s13 + $0x104] sm:$0xf] }
  0x52   : > { %707 = vmatmul.bf16.vlgmr.msra.gmra.mxu1 %v2568_v12  ;;  %828 = vmatpush.bf16.msrb.mxu3 %v1809_v29  ;;  %v1829_v29 = vor.u32 %v2020_v27, %v1828_v26  ;;  %v1986_v34 = vld [vmem:[%s3803_s2 + $0x38] sm:$0xf0]  ;;  %v2001_v46 = vld [vmem:[%s3803_s2 + $0xb0] sm:$0xf0]  ;;  %v1704_v47 = vld [vmem:[%s3803_s2 + $0x48] sm:$0xf] }
  0x53   : > { %728 = vmatpush.bf16.msrb.mxu1 %v1885_v6  ;;  %687 = vmatmul.bf16.vlgmr.msra.gmra.mxu0 %v2573_v16  ;;  %v2024_v6 = vld [vmem:[%s2485_s13 + $0xa4] sm:$0xf0]  ;;  %v1693_v36 = vor.u32 %v1986_v34, %v1692_v33  ;;  %v1894_v40 = vld [vmem:[%s2485_s13 + $0x108] sm:$0xf0]  ;;  %v1989_v48 = vld [vmem:[%s3803_s2 + $0x50] sm:$0xf0] }
  0x54   : > { %927 = vmatpush.bf16.msrb.mxu0 %v1929_v7  ;;  %878 = vmatpush.bf16.msrb.mxu2 %v1865_v10  ;;  %v2037_v7 = vld [vmem:[%s2485_s13 + $0x114] sm:$0xf]  ;;  %v1845_v10 = vor.u32 %v2024_v6, %v1844_v3  ;;  %v1897_v42 = vor.u32 %v2035_v39, %v1894_v40  ;;  %v1705_v50 = vor.u32 %v1989_v48, %v1704_v47  ;;  %v1670_v54 = vld [vmem:[%s3803_s2 + $0xc] sm:$0xf0]  ;;  %v1982_v58 = vld [vmem:[%s3803_s2 + $0x1c] sm:$0xf] }
  0x55   : > { %v1905_v11 = vor.u32 %v2037_v7, %v1902_v8  ;;  %v1993_v51 = vld [vmem:[%s3803_s2 + $0x70] sm:$0xf0]  ;;  %v1979_v53 = vld [vmem:[%s3803_s2 + $0x4] sm:$0xf]  ;;  %v1694_v60 = vld [vmem:[%s3803_s2 + $0x3c] sm:$0xf0] }
  0x56   : > { %829 = vmatpush.bf16.msrb.mxu3 %v1801_v38  ;;  %v1990_v38 = vld [vmem:[%s3803_s2 + $0x58] sm:$0xf0]  ;;  %v1706_v62 = vld [vmem:[%s3803_s2 + $0x54] sm:$0xf0]  ;;  %v1718_v1 = vld [vmem:[%s3803_s2 + $0x6c] sm:$0xf0] }
  0x57   : > { %729 = vmatpush.bf16.msrb.mxu1 %v1877_v19  ;;  %1931 = vmatmul.msk.bf16.gmra.mxu2 %vm654_vm0, %v2593_v28  ;;  %v2003_v19 = vld [vmem:[%s2485_s13 + $0x4] sm:$0xf]  ;;  %v1730_v13 = vld [vmem:[%s3803_s2 + $0x84] sm:$0xf0]  ;;  %p244_p6 = scmp.lt.s32.totalorder %s2426_s19, 1  ;;  %s1662_s23 = sshll.u32 %s2481_s6, 6 }
  0x58   : > { %928 = vmatpush.bf16.msrb.mxu0 %v1921_v21  ;;  %879 = vmatpush.bf16.msrb.mxu2 %v1857_v25  ;;  %v1766_v21 = vld [vmem:[%s2485_s13 + $0x8] sm:$0xf0]  ;;  %v1833_v25 = vor.u32 %v2019_v22, %v1830_v23  ;;  %s3513_s29 = scalar_lea.vmem [#allocation6], %s1662_s23  ;;  %s3611_s5 = scalar_lea.vmem [#allocation5], %s1662_s23 }
  0x59   : > { %1936 = vmatmul.msk.bf16.gmra.mxu3 %vm654_vm0, %v2595_v31  ;;  %v1769_v24 = vor.u32 %v2003_v19, %v1766_v21  ;;  %s3114_s11 = scalar_select %p244_p6, %s2426_s19, 1 }
  0x5a   : > { %830 = vmatpush.bf16.msrb.mxu3 %v1793_v52  ;;  %s2045_s28 = sshll.u32 %s2426_s19, 6  ;;  %s1536_s10 = sshll.u32 %s3513_s29, 4  ;;  %s1537_s10 = int_to_ptr.vmem [resolvable:$true] %s1536_s10 }
  0x5b   : > { %730 = vmatpush.bf16.msrb.mxu1 %v1869_v30  ;;  %v1740_v30 = vld [vmem:[%s3803_s2 + $0x90] sm:$0xf]  ;;  %s1978_s12 = sshll.u32 %s3114_s11, 6  ;;  %s1535_s7 = scalar_lea.hbm %s3805_s4, %s2045_s28 }
  0x5c   : > { %880 = vmatpush.bf16.msrb.mxu2 %v1849_v43  ;;  %929 = vmatpush.bf16.msrb.mxu0 %v1913_v44  ;;  %v2681_v35 = vor.u32 %v1998_v32, %v1740_v30  ;;  %v1752_v44 = vld [vmem:[%s3803_s2 + $0xa8] sm:$0xf]  ;;  %s3190_s22 = scalar_lea.vmem %s3802_s1, %s1978_s12  ;;  %s1538_s25 = sshll.u32 %s1535_s7, 4  ;;  %s1539_s25 = int_to_ptr.hbm [resolvable:$true] %s1538_s25 }
  0x5d   : > { %v2706_v49 = vor.u32 %v2001_v46, %v1752_v44  ;;  %s1518_s11 = scalar_lea.hbm %s3804_s3, %s2045_s28  ;;  %s1507_s12 = scalar_lea.sflag [#allocation7], %s2481_s6 }
  0x5e   : > { %831 = vmatpush.bf16.msrb.mxu3 %v1785_v2  ;;  %s2290_s14 = sshra.s32 %s1539_s25, 4  ;;  %s2296_s23 = scalar_lea.hbm %s3805_s4, 128  ;;  %s2291_s14 = int_to_ptr.hbm [resolvable:$true] %s2290_s14 }
  0x5f   : > { %731 = vmatpush.bf16.msrb.mxu1 %v1861_v37  ;;  %v1712_v37 = vld [vmem:[%s3803_s2 + $0x50] sm:$0xf]  ;;  %s2292_s20 = scalar_lea.hbm %s2291_s14, 64  ;;  %p2297_p4 = scmp.lt.s32.totalorder %s2291_s14, %s3805_s4 }
  0x60   : > { %881 = vmatpush.bf16.msrb.mxu2 %v1841_v5  ;;  %930 = vmatpush.bf16.msrb.mxu0 %v1905_v11  ;;  %v1713_v43 = vor.u32 %v1990_v38, %v1712_v37  ;;  %v1994_v11 = vld [vmem:[%s3803_s2 + $0x7c] sm:$0xf]  ;;  %v1754_v37 = vld [vmem:[%s3803_s2 + $0xb4] sm:$0xf0]  ;;  %p2293_p13 = scmp.ne.s32.totalorder %s2291_s14, %s2292_s20  ;;  %p2298_p5 = scmp.lt.s32.totalorder %s2296_s23, %s2292_s20 }
  0x62   : > { %712 = vmatmul.bf16.gmra.mxu1 %v2625_v56  ;;  %832 = vmatpush.bf16.msrb.mxu3 %v1777_v15  ;;  %v1733_v15 = vor.u32 %v1994_v11, %v1730_v13  ;;  %p2294_p2 = pnand %p2293_p13, %p2451_p11  ;;  %p2299_p7 = por %p2298_p5, %p2297_p4 }
  0x63   : > { %732 = vmatpush.bf16.msrb.mxu1 %v1853_v55  ;;  %692 = vmatmul.bf16.gmra.mxu0 %v2627_v57  ;;  %v1673_v55 = vor.u32 %v1979_v53, %v1670_v54 }
  0x64   : > { %882 = vmatpush.bf16.msrb.mxu2 %v1833_v25  ;;  %931 = vmatpush.bf16.msrb.mxu0 %v1897_v42  ;;  %v1742_v25 = vld [vmem:[%s3803_s2 + $0x9c] sm:$0xf0]  ;;  %p2295_p3 = pneg %p2294_p2 }
  0x66   : > { %833 = vmatpush.bf16.msrb.mxu3 %v1769_v24  ;;  %v1997_v24 = vld [vmem:[%s3803_s2 + $0x94] sm:$0xf]  ;;  %p2300_p8 = pnand %p2299_p7, %p2295_p3 }
  0x67   : > { %733 = vmatpush.bf16.msrb.mxu1 %v1845_v10  ;;  %1932 = vmatmul.msk.bf16.gmra.mxu2 %vm654_vm0, %v2648_v4  ;;  %v1745_v26 = vor.u32 %v1997_v24, %v1742_v25 }
  0x69   : > { %1937 = vmatmul.msk.bf16.gmra.mxu3 %vm654_vm0, %v2653_v9 }
  0x6b   : > { %734 = vmatpush.bf16.msrb.mxu1 %v1837_v20 }
  0x6f   : > { %735 = vmatpush.bf16.msrb.mxu1 %v1829_v29 }
  0x72   : > { %717 = vmatmul.bf16.gmra.mxu1 %v2681_v35 }
  0x73   : > { %697 = vmatmul.bf16.gmra.mxu0 %v1693_v36 }
  0x77   : > { %1933 = vmatmul.msk.bf16.gmra.mxu2 %vm654_vm0, %v1713_v43 }
  0x79   : > { %834 = vmatmul.bf16.vlgmr.msrb.gmra.mxu3 %v2573_v16  ;;  %v1724_v16 = vld [vmem:[%s3803_s2 + $0x68] sm:$0xf] }
  0x7a   : > { %v1725_v52 = vor.u32 %v1993_v51, %v1724_v16 }
  0x82   : > { %722 = vmatmul.bf16.gmra.mxu1 %v2706_v49 }
  0x83   : > { %702 = vmatmul.bf16.gmra.mxu0 %v1705_v50 }
  0x87   : > { %1934 = vmatmul.msk.bf16.gmra.mxu2 %vm654_vm0, %v1725_v52 }
  0x89   : > { %839 = vmatmul.bf16.gmra.mxu3 %v2627_v57  ;;  %v1682_v57 = vld [vmem:[%s3803_s2 + $0x24] sm:$0xf0] }
  0x8a   : > { %v1685_v59 = vor.u32 %v1982_v58, %v1682_v57 }
  0x92   : > { %736 = vmatmul.bf16.vlgmr.msrb.gmra.mxu1 %v1673_v55 }
  0x93   : > { %1938 = vmatmul.msk.bf16.vlgmr.msrb.gmra.mxu0 %vm654_vm0, %v2529_v41  ;;  %v1985_v41 = vld [vmem:[%s3803_s2 + $0x34] sm:$0xf] }
  0x94   : > { %v1697_v61 = vor.u32 %v1985_v41, %v1694_v60 }
  0x97   : > { %883 = vmatmul.bf16.vlgmr.msrb.gmra.mxu2 %v1673_v55 }
  0x99   : > { %844 = vmatmul.bf16.gmra.mxu3 %v1693_v36  ;;  %v2000_v36 = vld [vmem:[%s3803_s2 + $0xac] sm:$0xf] }
  0x9a   : > { %v1757_v39 = vor.u32 %v2000_v36, %v1754_v37 }
  0xa2   : > { %741 = vmatmul.bf16.gmra.mxu1 %v1685_v59 }
  0xa3   : > { %1939 = vmatmul.msk.bf16.gmra.mxu0 %vm654_vm0, %v2593_v28  ;;  %v1988_v28 = vld [vmem:[%s3803_s2 + $0x4c] sm:$0xf] }
  0xa4   : > { %v1709_v63 = vor.u32 %v1988_v28, %v1706_v62 }
  0xa7   : > { %888 = vmatmul.bf16.gmra.mxu2 %v1685_v59 }
  0xa9   : > { %849 = vmatmul.bf16.gmra.mxu3 %v1705_v50 }
  0xb2   : > { %746 = vmatmul.bf16.gmra.mxu1 %v1697_v61 }
  0xb3   : > { %1940 = vmatmul.msk.bf16.gmra.mxu0 %vm654_vm0, %v2648_v4 }
  0xb7   : > { %893 = vmatmul.bf16.gmra.mxu2 %v1697_v61 }
  0xb9   : > { %854 = vmatmul.bf16.gmra.mxu3 %v2568_v12  ;;  %v1991_v12 = vld [vmem:[%s3803_s2 + $0x64] sm:$0xf] }
  0xba   : > { %v1721_v3 = vor.u32 %v1991_v12, %v1718_v1 }
  0xc2   : > { %751 = vmatmul.bf16.gmra.mxu1 %v1709_v63 }
  0xc3   : > { %1941 = vmatmul.msk.bf16.gmra.mxu0 %vm654_vm0, %v1713_v43 }
  0xc7   : > { %898 = vmatmul.bf16.gmra.mxu2 %v1709_v63 }
  0xc9   : > { %859 = vmatmul.bf16.gmra.mxu3 %v2625_v56 }
  0xca   : > { %v2750_v0 = vpop.f32.mrf.mxu2 }
  0xcc   : > { %v2758_v2 = vpop.f32.mrf.mxu3 }
  0xcf   : > { %v2760_v4 = vpop.f32.mrf.mxu1 }
  0xd0   : > { %v688_v5 = vpop.f32.mrf.mxu0 }
  0xd2   : > { %v788_v6 = vpop.f32.mrf.mxu2  ;;  %756 = vmatmul.bf16.gmra.mxu1 %v1721_v3 }
  0xd3   : > { %1942 = vmatmul.msk.bf16.gmra.mxu0 %vm654_vm0, %v1725_v52 }
  0xd4   : > { %v2763_v56 = vpop.f32.mrf.mxu3 }
  0xd7   : > { %903 = vmatmul.bf16.gmra.mxu2 %v1721_v3  ;;  %v2765_v7 = vpop.f32.mrf.mxu1 }
  0xd8   : > { %v690_v8 = vpop.f32.mrf.mxu0 }
  0xd9   : > { %864 = vmatmul.bf16.gmra.mxu3 %v2681_v35 }
  0xda   : > { %v2768_v10 = vpop.f32.mrf.mxu2 }
  0xdc   : > { %v2776_v14 = vpop.f32.mrf.mxu3 }
  0xdf   : > { %v2778_v17 = vpop.f32.mrf.mxu1 }
  0xe0   : > { %v693_v18 = vpop.f32.mrf.mxu0 }
  0xe2   : > { %v2780_v19 = vpop.f32.mrf.mxu2  ;;  %761 = vmatmul.bf16.gmra.mxu1 %v1733_v15 }
  0xe3   : > { %1943 = vmatmul.msk.bf16.gmra.mxu0 %vm654_vm0, %v2533_v45 }
  0xe4   : > { %v2784_v20 = vpop.f32.mrf.mxu3 }
  0xe7   : > { %908 = vmatmul.bf16.gmra.mxu2 %v1733_v15  ;;  %v2786_v21 = vpop.f32.mrf.mxu1 }
  0xe8   : > { %v2788_v22 = vpop.f32.mrf.mxu0 }
  0xe9   : > { %869 = vmatmul.bf16.gmra.mxu3 %v2706_v49 }
  0xea   : > { %v2791_v23 = vpop.f32.mrf.mxu2 }
  0xec   : > { %v2799_v45 = vpop.f32.mrf.mxu3 }
  0xef   : > { %v2801_v27 = vpop.f32.mrf.mxu1 }
  0xf0   : > { %v2803_v29 = vpop.f32.mrf.mxu0 }
  0xf2   : > { %v2805_v30 = vpop.f32.mrf.mxu2  ;;  %766 = vmatmul.bf16.gmra.mxu1 %v1745_v26 }
  0xf3   : > { %1944 = vmatmul.msk.bf16.gmra.mxu0 %vm654_vm0, %v2595_v31 }
  0xf4   : > { %v2809_v32 = vpop.f32.mrf.mxu3 }
  0xf7   : > { %913 = vmatmul.bf16.gmra.mxu2 %v1745_v26  ;;  %v2811_v33 = vpop.f32.mrf.mxu1 }
  0xf8   : > { %v2813_v34 = vpop.f32.mrf.mxu0 }
  0xfa   : > { %v2815_v35 = vpop.f32.mrf.mxu2 }
  0xfc   : > { %v835_v38 = vpop.f32.mrf.mxu3 }
  0xff   : > { %v2823_v31 = vpop.f32.mrf.mxu1 }
 0x100   : > { %v2825_v40 = vpop.f32.mrf.mxu0 }
 0x102   : > { %v2827_v42 = vpop.f32.mrf.mxu2  ;;  %771 = vmatmul.bf16.gmra.mxu1 %v1757_v39 }
 0x103   : > { %1945 = vmatmul.msk.bf16.gmra.mxu0 %vm654_vm0, %v2653_v9 }
 0x104   : > { %v837_v43 = vpop.f32.mrf.mxu3 }
 0x107   : > { %918 = vmatmul.bf16.gmra.mxu2 %v1757_v39  ;;  %v2831_v44 = vpop.f32.mrf.mxu1 }
 0x108   : > { %v2833_v46 = vpop.f32.mrf.mxu0 }
 0x10a   : > { %v2835_v47 = vpop.f32.mrf.mxu2 }
 0x10c   : > { %v840_v16 = vpop.f32.mrf.mxu3 }
 0x10f   : > { %v737_v48 = vpop.f32.mrf.mxu1 }
 0x110   : > { %v738_v49 = vadd.f32 %v737_v48, %v688_v5  ;;  %v933_v50 = vpop.f32.mrf.mxu0 }
 0x112   : > { %v787_v51 = vadd.f32 %v2750_v0, %v738_v49  ;;  %v2838_v52 = vpop.f32.mrf.mxu2 }
 0x114   : > { %v1946_v9 = vmul.f32 -1.442695, %v787_v51  ;;  %v842_v59 = vpop.f32.mrf.mxu3 }
 0x116   : > { %2118 = vpow2.f32 %v1946_v9 }
 0x117   : > { %v739_v53 = vpop.f32.mrf.mxu1 }
 0x118   : > { %v740_v54 = vadd.f32 %v739_v53, %v690_v8  ;;  %v935_v55 = vpop.f32.mrf.mxu0 }
 0x11a   : > { %v789_v58 = vadd.f32 %v788_v6, %v740_v54  ;;  %v884_v57 = vpop.f32.mrf.mxu2 }
 0x11b   : > { %v885_v41 = vadd.f32 %v884_v57, %v835_v38 }
 0x11c   : > { %v1948_v63 = vmul.f32 -1.442695, %v789_v58  ;;  %v2119_v5 = vpop.eup %2118  ;;  %v845_v11 = vpop.f32.mrf.mxu3 }
 0x11d   : > { %v934_v60 = vadd.f32 %v933_v50, %v885_v41  ;;  %v2841_v6 = vadd.f32 1.0, %v2119_v5 }
 0x11e   : > { %2120 = vpow2.f32 %v1948_v63 }
 0x11f   : > { %v742_v61 = vpop.f32.mrf.mxu1  ;;  %v1947_v12 = vmul.f32 -1.442695, %v934_v60  ;;  %vm1010_vm1 = vweird.f32 %v2841_v6 }
 0x120   : > { %v743_v28 = vadd.f32 %v742_v61, %v693_v18  ;;  %v938_v62 = vpop.f32.mrf.mxu0 }
 0x121   : > { %2122 = vpow2.f32 %v1947_v12 }
 0x122   : > { %v792_v1 = vadd.f32 %v2768_v10, %v743_v28  ;;  %v886_v0 = vpop.f32.mrf.mxu2  ;;  %2124 = vrcp.f32 %v2841_v6 }
 0x123   : > { %v887_v3 = vadd.f32 %v886_v0, %v837_v43 }
 0x124   : > { %v1950_v15 = vmul.f32 -1.442695, %v792_v1  ;;  %v2121_v36 = vpop.eup %2120  ;;  %v2848_v48 = vpop.f32.mrf.mxu3 }
 0x125   : > { %v936_v8 = vadd.f32 %v935_v55, %v887_v3  ;;  %v2846_v43 = vadd.f32 1.0, %v2121_v36 }
 0x126   : > { %2126 = vpow2.f32 %v1950_v15 }
 0x127   : > { %v744_v13 = vpop.f32.mrf.mxu1  ;;  %v2123_v37 = vpop.eup %2122  ;;  %v1949_v38 = vmul.f32 -1.442695, %v936_v8  ;;  %vm1040_vm4 = vweird.f32 %v2846_v43 }
 0x128   : > { %v745_v24 = vadd.f32 %v744_v13, %v2788_v22  ;;  %v940_v25 = vpop.f32.mrf.mxu0  ;;  %v2850_v49 = vadd.f32 1.0, %v2123_v37 }
 0x129   : > { %2128 = vpow2.f32 %v1949_v38 }
 0x12a   : > { %v794_v18 = vadd.f32 %v2780_v19, %v745_v24  ;;  %v889_v26 = vpop.f32.mrf.mxu2  ;;  %v2853_v19 = vpop.eup %2124  ;;  %2130 = vrcp.f32 %v2846_v43  ;;  %vm1025_vm7 = vweird.f32 %v2850_v49 }
 0x12b   : > { %v890_v10 = vadd.f32 %v889_v26, %v840_v16  ;;  %2132 = vrcp.f32 %v2850_v49  ;;  %v1006_v58 = vmul.f32 %v2853_v19, %v2841_v6  ;;  %vm1011_vm3 = vweird.f32 %v2853_v19 }
 0x12c   : > { %v1952_v53 = vmul.f32 -1.442695, %v794_v18  ;;  %v2127_v54 = vpop.eup %2126  ;;  %v1016_v18 = vand.u32 2147483648, %v2841_v6  ;;  %vm2915_vm5 = vmor %vm1010_vm1, %vm1011_vm3 }
 0x12d   : > { %v939_v39 = vadd.f32 %v938_v62, %v890_v10  ;;  %v2860_v57 = vadd.f32 1.0, %v2127_v54 }
 0x12e   : > { %2134 = vpow2.f32 %v1952_v53  ;;  %v1017_v54 = vor.u32 1.1754944e-38, %v1016_v18 }
 0x12f   : > { %v747_v50 = vpop.f32.mrf.mxu1  ;;  %v2129_v41 = vpop.eup %2128  ;;  %2136 = vrcp.f32 %v2860_v57  ;;  %v1951_v1 = vmul.f32 -1.442695, %v939_v39  ;;  %vm1070_vm12 = vweird.f32 %v2860_v57 }
 0x130   : > { %v748_v22 = vadd.f32 %v747_v50, %v2803_v29  ;;  %v943_v51 = vpop.f32.mrf.mxu0  ;;  %v2862_v28 = vpop.eup %2130  ;;  %v2870_v0 = vadd.f32 1.0, %v2129_v41 }
 0x131   : > { %v2867_v12 = vpop.eup %2132  ;;  %v1036_v13 = vmul.f32 %v2862_v28, %v2846_v43  ;;  %vm1041_vm8 = vweird.f32 %v2862_v28 }
 0x132   : > { %v797_v16 = vadd.f32 %v2791_v23, %v748_v22  ;;  %v891_v55 = vpop.f32.mrf.mxu2  ;;  %v2865_v23 = vpop.f32.mrf.mxu3  ;;  %v1021_v15 = vmul.f32 %v2867_v12, %v2850_v49  ;;  %vm1026_vm10 = vweird.f32 %v2867_v12  ;;  %vm2959_vm11 = vmor %vm1040_vm4, %vm1041_vm8  ;;  %vm1055_vm14 = vweird.f32 %v2870_v0 }
 0x133   : > { %v892_v9 = vadd.f32 %v891_v55, %v842_v59  ;;  %v1007_v59 = vsub.f32 1.0, %v1006_v58  ;;  %v1037_v37 = vsub.f32 1.0, %v1036_v13  ;;  %v1029_v58 = vand.u32 2147483647, %v2850_v49  ;;  %vm2974_vm13 = vmor %vm1025_vm7, %vm1026_vm10 }
 0x134   : > { %v1954_v60 = vmul.f32 -1.442695, %v797_v16  ;;  %v2135_v8 = vpop.eup %2134  ;;  %v1022_v39 = vsub.f32 1.0, %v1021_v15 }
 0x135   : > { %v941_v29 = vadd.f32 %v940_v25, %v892_v9  ;;  %v1014_v25 = vand.u32 2147483647, %v2841_v6  ;;  %v1008_v26 = vmul.f32 %v2853_v19, %v1007_v59  ;;  %v2883_v10 = vpop.eup %2136  ;;  %v1044_v9 = vand.u32 2147483647, %v2846_v43 }
 0x136   : > { %2138 = vpow2.f32 %v1954_v60  ;;  %v1031_v6 = vand.u32 2147483648, %v2850_v49  ;;  %vm2932_vm9 = vcmp.eq.f32.partialorder %v1029_v58, 8.507059e+37  ;;  %vm1071_vm15 = vweird.f32 %v2883_v10 }
 0x137   : > { %v749_v61 = vpop.f32.mrf.mxu1  ;;  %2140 = vpow2.f32 %v1951_v1  ;;  %vm2889_vm2 = vcmp.eq.f32.partialorder %v1014_v25, 8.507059e+37  ;;  %v1009_v55 = vadd.f32 %v2853_v19, %v1008_v26  ;;  %v1038_v1 = vmul.f32 %v2862_v28, %v1037_v37 }
 0x138   : > { %v750_v62 = vadd.f32 %v749_v61, %v2813_v34  ;;  %v945_v63 = vpop.f32.mrf.mxu0  ;;  %2142 = vrcp.f32 %v2870_v0  ;;  %vm2923_vm6 = vcmp.eq.f32.partialorder %v1044_v9, 8.507059e+37 }
 0x139   : > { %v1039_v37 = vadd.f32 %v2862_v28, %v1038_v1 }
 0x13a   : > { %v799_v3 = vadd.f32 %v2805_v30, %v750_v62  ;;  %v894_v5 = vpop.f32.mrf.mxu2  ;;  %v2881_v30 = vadd.f32 1.0, %v2135_v8  ;;  %v2902_v61 = vpop.f32.mrf.mxu3 }
 0x13b   : > { %v895_v34 = vadd.f32 %v894_v5, %v845_v11  ;;  %v1953_v11 = vmul.f32 -1.442695, %v941_v29 }
 0x13c   : > { %v1956_v24 = vmul.f32 -1.442695, %v799_v3  ;;  %v2139_v16 = vpop.eup %2138  ;;  %vm1100_vm4 = vweird.f32 %v2881_v30 }
 0x13d   : > { %v944_v36 = vadd.f32 %v943_v51, %v895_v34  ;;  %v1046_v51 = vand.u32 2147483648, %v2846_v43  ;;  %v2141_v62 = vpop.eup %2140  ;;  %v2909_v5 = vadd.f32 1.0, %v2139_v16 }
 0x13e   : > { %2144 = vpow2.f32 %v1956_v24  ;;  %v2907_v3 = vpop.eup %2142  ;;  %v1013_v24 = vsel %vm2915_vm5, %v2853_v19, %v1009_v55  ;;  %v2929_v26 = vadd.f32 1.0, %v2141_v62  ;;  %v1043_v62 = vsel %vm2959_vm11, %v2862_v28, %v1039_v37 }
 0x13f   : > { %v752_v38 = vpop.f32.mrf.mxu1  ;;  %2146 = vrcp.f32 %v2881_v30  ;;  %v1955_v29 = vmul.f32 -1.442695, %v944_v36  ;;  %v1047_v13 = vor.u32 1.1754944e-38, %v1046_v51  ;;  %v1051_v19 = vmul.f32 %v2907_v3, %v2870_v0 }
 0x140   : > { %v753_v50 = vadd.f32 %v752_v38, %v2825_v40  ;;  %v2887_v22 = vpop.f32.mrf.mxu0  ;;  %v1066_v40 = vmul.f32 %v2883_v10, %v2860_v57  ;;  %2148 = vpow2.f32 %v1953_v11  ;;  %v1076_v11 = vand.u32 2147483648, %v2860_v57 }
 0x141   : > { %2150 = vpow2.f32 %v1955_v29  ;;  %v2952_v58 = vsel %vm2889_vm2, %v1017_v54, %v1013_v24  ;;  %v1052_v53 = vsub.f32 1.0, %v1051_v19  ;;  %vm1056_vm1 = vweird.f32 %v2907_v3  ;;  %vm3029_vm2 = vmor %vm1070_vm12, %vm1071_vm15 }
 0x142   : > { %v802_v41 = vadd.f32 %v2815_v35, %v753_v50  ;;  %v896_v60 = vpop.f32.mrf.mxu2  ;;  %v1067_v18 = vsub.f32 1.0, %v1066_v40  ;;  %v1032_v40 = vor.u32 1.1754944e-38, %v1031_v6  ;;  %vm1162_vm7 = vweird.f32 %v2909_v5 }
 0x143   : > { %v897_v59 = vadd.f32 %v896_v60, %v2848_v48  ;;  %v1023_v48 = vmul.f32 %v2867_v12, %v1022_v39 }
 0x144   : > { %v1958_v8 = vmul.f32 -1.442695, %v802_v41  ;;  %v2145_v34 = vpop.eup %2144  ;;  %v1068_v60 = vmul.f32 %v2883_v10, %v1067_v18  ;;  %v2999_v18 = vsel %vm2923_vm6, %v1047_v13, %v1043_v62  ;;  %vm3070_vm6 = vmor %vm1055_vm14, %vm1056_vm1 }
 0x145   : > { %v946_v15 = vadd.f32 %v945_v63, %v897_v59  ;;  %v2940_v38 = vpop.eup %2146  ;;  %v2943_v39 = vadd.f32 1.0, %v2145_v34  ;;  %v1024_v51 = vadd.f32 %v2867_v12, %v1023_v48  ;;  %v2978_v59 = vor.u32 1.1754944e-38, %v1076_v11 }
 0x146   : > { %2152 = vpow2.f32 %v1958_v8  ;;  %v2149_v16 = vpop.eup %2148  ;;  %v1096_v8 = vmul.f32 %v2940_v38, %v2881_v30  ;;  %v1059_v34 = vand.u32 2147483647, %v2870_v0  ;;  %vm1101_vm5 = vweird.f32 %v2940_v38 }
 0x147   : > { %v754_v36 = vpop.f32.mrf.mxu1  ;;  %2154 = vrcp.f32 %v2909_v5  ;;  %v1957_v55 = vmul.f32 -1.442695, %v946_v15  ;;  %v2151_v1 = vpop.eup %2150  ;;  %v2982_v35 = vadd.f32 1.0, %v2149_v16  ;;  %v1028_v49 = vsel %vm2974_vm13, %v2867_v12, %v1024_v51  ;;  %vm3121_vm10 = vmor %vm1100_vm4, %vm1101_vm5 }
 0x148   : > { %v2945_v50 = vpop.f32.mrf.mxu0  ;;  %v755_v9 = vadd.f32 %v754_v36, %v2833_v46  ;;  %2156 = vrcp.f32 %v2929_v26  ;;  %v1074_v46 = vand.u32 2147483647, %v2860_v57  ;;  %v1061_v15 = vand.u32 2147483648, %v2870_v0 }
 0x149   : > { %3827 = vst [vmem:[#allocation11_spill] sm:$0xff] %v2982_v35  ;;  %2158 = vrcp.f32 %v2943_v39  ;;  %v1069_v12 = vadd.f32 %v2883_v10, %v1068_v60  ;;  %v3007_v19 = vadd.f32 1.0, %v2151_v1  ;;  %v3011_v37 = vsel %vm2932_vm9, %v1032_v40, %v1028_v49 }
 0x14a   : > { %v899_v29 = vpop.f32.mrf.mxu2  ;;  %2160 = vpow2.f32 %v1957_v55  ;;  %v804_v48 = vadd.f32 %v2827_v42, %v755_v9  ;;  %vm3003_vm0 = vcmp.eq.f32.partialorder %v1074_v46, 8.507059e+37  ;;  %v1097_v25 = vsub.f32 1.0, %v1096_v8 }
 0x14b   : > { %v900_v54 = vadd.f32 %v899_v29, %v2865_v23  ;;  %v2985_v23 = vpop.f32.mrf.mxu3  ;;  %2162 = vrcp.f32 %v2982_v35  ;;  %vm3033_vm3 = vcmp.eq.f32.partialorder %v1059_v34, 8.507059e+37  ;;  %v1062_v29 = vor.u32 1.1754944e-38, %v1061_v15 }
 0x14c   : > { %v2153_v28 = vpop.eup %2152  ;;  %v1960_v55 = vmul.f32 -1.442695, %v804_v48  ;;  %v1168_v60 = vand.u32 2147483648, %v2909_v5  ;;  %v1073_v57 = vsel %vm3029_vm2, %v2883_v10, %v1069_v12  ;;  %2164 = vrcp.f32 %v3007_v19 }
 0x14d   : > { %v2994_v24 = vpop.eup %2154  ;;  %v949_v6 = vadd.f32 %v2887_v22, %v900_v54  ;;  %v1053_v22 = vmul.f32 %v2907_v3, %v1052_v53  ;;  %v3018_v11 = vadd.f32 1.0, %v2153_v28  ;;  %v1106_v54 = vand.u32 2147483648, %v2881_v30 }
 0x14e   : > { %v3015_v13 = vpop.eup %2156  ;;  %v1158_v63 = vmul.f32 %v2994_v24, %v2909_v5  ;;  %v1098_v10 = vmul.f32 %v2940_v38, %v1097_v25  ;;  %v1166_v34 = vand.u32 2147483647, %v2909_v5  ;;  %v1198_v0 = vand.u32 2147483648, %v2943_v39 }
 0x14f   : > { %v757_v36 = vpop.f32.mrf.mxu1  ;;  %v3038_v41 = vpop.eup %2158  ;;  %v1959_v46 = vmul.f32 -1.442695, %v949_v6  ;;  %v1081_v43 = vmul.f32 %v3015_v13, %v2929_v26  ;;  %v1054_v8 = vadd.f32 %v2907_v3, %v1053_v22  ;;  %2166 = vrcp.f32 %v3018_v11 }
 0x150   : > { %v758_v51 = vadd.f32 %v757_v36, %v2760_v4  ;;  %v3021_v16 = vpop.f32.mrf.mxu0  ;;  %v1104_v4 = vand.u32 2147483647, %v2881_v30  ;;  %v2161_v62 = vpop.eup %2160  ;;  %v1159_v28 = vsub.f32 1.0, %v1158_v63  ;;  %2168 = vpow2.f32 %v1960_v55 }
 0x151   : > { %v3056_v15 = vpop.eup %2162  ;;  %v3058_v6 = vor.u32 1.1754944e-38, %v1168_v60  ;;  %v3062_v12 = vadd.f32 1.0, %v2161_v62  ;;  %2170 = vpow2.f32 %v1959_v46  ;;  %v1082_v22 = vsub.f32 1.0, %v1081_v43 }
 0x152   : > { %v901_v53 = vpop.f32.mrf.mxu2  ;;  %v807_v1 = vadd.f32 %v2835_v47, %v758_v51  ;;  %3834 = vst [vmem:[#allocation12_spill] sm:$0xff] %v3056_v15  ;;  %v1188_v47 = vmul.f32 %v3038_v41, %v2943_v39  ;;  %v3079_v51 = vsel %vm3003_vm0, %v2978_v59, %v1073_v57  ;;  %v1058_v63 = vsel %vm3070_vm6, %v2907_v3, %v1054_v8 }
 0x153   : > { %v902_v49 = vadd.f32 %v901_v53, %v2902_v61  ;;  %v3064_v61 = vpop.f32.mrf.mxu3  ;;  %v1099_v46 = vadd.f32 %v2940_v38, %v1098_v10  ;;  %v3090_v53 = vpop.eup %2164  ;;  %v1160_v59 = vmul.f32 %v2994_v24, %v1159_v28  ;;  %v3095_v42 = vmul.f32 %v3056_v15, %v2982_v35 }
 0x154   : > { %v1962_v48 = vmul.f32 -1.442695, %v807_v1  ;;  %vm3097_vm8 = vcmp.eq.f32.partialorder %v1104_v4, 8.507059e+37  ;;  %v1189_v57 = vsub.f32 1.0, %v1188_v47  ;;  %v1183_v62 = vand.u32 2147483648, %v3007_v19 }
 0x155   : > { %v951_v55 = vadd.f32 %v2945_v50, %v902_v49  ;;  %3837 = vst [vmem:[#allocation13_spill] sm:$0xff] %v3095_v42  ;;  %v1107_v50 = vor.u32 1.1754944e-38, %v1106_v54  ;;  %v3107_v1 = vsel %vm3033_vm3, %v1062_v29, %v1058_v63  ;;  %vm1163_vm9 = vweird.f32 %v2994_v24 }
 0x156   : > { %2172 = vpow2.f32 %v1962_v48  ;;  %3840 = vst [vmem:[#allocation14_spill] sm:$0xff] %v3107_v1  ;;  %v1196_v54 = vand.u32 2147483647, %v2943_v39  ;;  %v1083_v40 = vmul.f32 %v3015_v13, %v1082_v22  ;;  %vm1192_vm11 = vweird.f32 %v2943_v39  ;;  %vm3159_vm13 = vmor %vm1162_vm7, %vm1163_vm9 }
 0x157   : > { %v759_v25 = vpop.f32.mrf.mxu1  ;;  %2174 = vrcp.f32 %v3062_v12  ;;  %v3127_v10 = vor.u32 1.1754944e-38, %v1198_v0  ;;  %vm3130_vm12 = vcmp.eq.f32.partialorder %v1166_v34, 8.507059e+37  ;;  %v1103_v30 = vsel %vm3121_vm10, %v2940_v38, %v1099_v46 }
 0x158   : > { %v760_v9 = vadd.f32 %v759_v25, %v2765_v7  ;;  %v3087_v60 = vpop.f32.mrf.mxu0  ;;  %v3101_v7 = vpop.eup %2166  ;;  %v1173_v22 = vmul.f32 %v3090_v53, %v3007_v19  ;;  %v1161_v63 = vadd.f32 %v2994_v24, %v1160_v59  ;;  %v3142_v0 = vor.u32 1.1754944e-38, %v1183_v62 }
 0x159   : > { %v2169_v8 = vpop.eup %2168  ;;  %v1218_v38 = vmul.f32 %v3101_v7, %v3018_v11  ;;  %vm3168_vm14 = vcmp.eq.f32.partialorder %v1196_v54, 8.507059e+37  ;;  %v3174_v49 = vsel %vm3097_vm8, %v1107_v50, %v1103_v30  ;;  %vm1193_vm15 = vweird.f32 %v3038_v41 }
 0x15a   : > { %v904_v43 = vpop.f32.mrf.mxu2  ;;  %v809_v4 = vadd.f32 %v2838_v52, %v760_v9  ;;  %v2171_v29 = vpop.eup %2170  ;;  %v1961_v52 = vmul.f32 -1.442695, %v951_v55  ;;  %v3144_v34 = vadd.f32 1.0, %v2169_v8  ;;  %3849 = vst [vmem:[#allocation15_spill] sm:$0xff] %v3174_v49  ;;  %v1174_v5 = vsub.f32 1.0, %v1173_v22  ;;  %vm3207_vm2 = vmor %vm1192_vm11, %vm1193_vm15 }
 0x15b   : > { %v905_v28 = vadd.f32 %v904_v43, %v2985_v23  ;;  %v1190_v23 = vmul.f32 %v3038_v41, %v1189_v57  ;;  %v3149_v9 = vadd.f32 1.0, %v2171_v29  ;;  %v1181_v43 = vand.u32 2147483647, %v3007_v19  ;;  %v3166_v62 = vpop.f32.mrf.mxu3 }
 0x15c   : > { %v2173_v47 = vpop.eup %2172  ;;  %v1964_v25 = vmul.f32 -1.442695, %v809_v4  ;;  %v1165_v29 = vsel %vm3159_vm13, %v2994_v24, %v1161_v63  ;;  %v1219_v50 = vsub.f32 1.0, %v1218_v38  ;;  %vm1177_vm0 = vweird.f32 %v3007_v19  ;;  %v1437_v38 = vld [vmem:[%s3190_s22] sm:$0xff] }
 0x15d   : > { %v954_v55 = vadd.f32 %v3021_v16, %v905_v28  ;;  %v3153_v4 = vpop.eup %2174  ;;  %v1228_v16 = vand.u32 2147483648, %v3018_v11  ;;  %v3164_v57 = vadd.f32 1.0, %v2173_v47  ;;  %v3181_v28 = vadd.f32 %v3015_v13, %v1083_v40 }
 0x15e   : > { %2176 = vpow2.f32 %v1964_v25  ;;  %v1191_v3 = vadd.f32 %v3038_v41, %v1190_v23  ;;  %v1203_v24 = vmul.f32 %v3153_v4, %v3062_v12  ;;  %vm1178_vm1 = vweird.f32 %v3090_v53 }
 0x15f   : > { %v762_v46 = vpop.f32.mrf.mxu1  ;;  %2178 = vpow2.f32 %v1961_v52  ;;  %3850 = vst [vmem:[#allocation16_spill] sm:$0xff] %v3181_v28  ;;  %v1963_v54 = vmul.f32 -1.442695, %v954_v55  ;;  %v1213_v30 = vand.u32 2147483648, %v3062_v12  ;;  %vm1222_vm3 = vweird.f32 %v3018_v11  ;;  %vm3276_vm8 = vmor %vm1177_vm0, %vm1178_vm1 }
 0x160   : > { %2180 = vrcp.f32 %v3144_v34  ;;  %v763_v52 = vadd.f32 %v762_v46, %v2778_v17  ;;  %v3185_v25 = vpop.f32.mrf.mxu0  ;;  %v3199_v17 = vor.u32 1.1754944e-38, %v1228_v16  ;;  %v1170_v55 = vsel %vm3130_vm12, %v3058_v6, %v1165_v29 }
 0x161   : > { %2182 = vrcp.f32 %v3149_v9  ;;  %v1175_v59 = vmul.f32 %v3090_v53, %v1174_v5  ;;  %v1195_v16 = vsel %vm3207_vm2, %v3038_v41, %v1191_v3  ;;  %v3228_v29 = vor.u32 1.1754944e-38, %v1213_v30 }
 0x162   : > { %v906_v47 = vpop.f32.mrf.mxu2  ;;  %2184 = vrcp.f32 %v3164_v57  ;;  %v3231_v5 = vmul.f32 %v1437_v38, %v1170_v55  ;;  %vm3243_vm4 = vcmp.eq.f32.partialorder %v1181_v43, 8.507059e+37  ;;  %vm1223_vm5 = vweird.f32 %v3101_v7 }
 0x163   : > { %v907_v40 = vadd.f32 %v906_v47, %v3064_v61  ;;  %2186 = vpow2.f32 %v1963_v54  ;;  %v812_v61 = vadd.f32 %v2758_v2, %v763_v52  ;;  %v1226_v54 = vand.u32 2147483647, %v3018_v11  ;;  %vm3290_vm9 = vmor %vm1222_vm3, %vm1223_vm5 }
 0x164   : > { %v2177_v22 = vpop.eup %2176  ;;  %v1220_v2 = vmul.f32 %v3101_v7, %v1219_v50  ;;  %vm1207_vm6 = vweird.f32 %v3062_v12  ;;  %v1176_v38 = vadd.f32 %v3090_v53, %v1175_v59  ;;  %vm1208_vm10 = vweird.f32 %v3153_v4 }
 0x165   : > { %v956_v23 = vadd.f32 %v3087_v60, %v907_v40  ;;  %v2179_v46 = vpop.eup %2178  ;;  %v3219_v39 = vadd.f32 1.0, %v2177_v22  ;;  %v1204_v60 = vsub.f32 1.0, %v1203_v24  ;;  %v1966_v52 = vmul.f32 -1.442695, %v812_v61  ;;  %v1439_v22 = vld [vmem:[%s3190_s22 + $0x10] sm:$0xff]  ;;  %vm3331_vm12 = vmor %vm1207_vm6, %vm1208_vm10 }
 0x166   : > { %v3226_v6 = vpop.eup %2180  ;;  %v1211_v40 = vand.u32 2147483647, %v3062_v12  ;;  %v3236_v3 = vadd.f32 1.0, %v2179_v46  ;;  %v1200_v24 = vsel %vm3168_vm14, %v3127_v10, %v1195_v16  ;;  %v1258_v61 = vand.u32 2147483648, %v3144_v34 }
 0x167   : > { %v1965_v47 = vmul.f32 -1.442695, %v956_v23  ;;  %v764_v48 = vpop.f32.mrf.mxu1  ;;  %2188 = vrcp.f32 %v3219_v39  ;;  %v3234_v41 = vpop.eup %2182  ;;  %vm3254_vm7 = vcmp.eq.f32.partialorder %v1226_v54, 8.507059e+37  ;;  %v1205_v43 = vmul.f32 %v3153_v4, %v1204_v60 }
 0x168   : > { %2190 = vpow2.f32 %v1966_v52  ;;  %v765_v50 = vadd.f32 %v764_v48, %v2786_v21  ;;  %v3247_v63 = vpop.eup %2184  ;;  %v3252_v23 = vpop.f32.mrf.mxu3  ;;  %v1221_v46 = vadd.f32 %v3101_v7, %v1220_v2  ;;  %v1248_v16 = vmul.f32 %v3226_v6, %v3144_v34 }
 0x169   : > { %2192 = vpow2.f32 %v1965_v47  ;;  %v2187_v10 = vpop.eup %2186  ;;  %v1233_v52 = vmul.f32 %v3234_v41, %v3149_v9  ;;  %v3268_v54 = vpop.f32.mrf.mxu0  ;;  %v3270_v48 = vmul.f32 %v1439_v22, %v1200_v24  ;;  %v1310_v59 = vmul.f32 %v3247_v63, %v3164_v57 }
 0x16a   : > { %v909_v21 = vpop.f32.mrf.mxu2  ;;  %v814_v55 = vadd.f32 %v2763_v56, %v765_v50  ;;  %v3266_v47 = vadd.f32 1.0, %v2187_v10  ;;  %2194 = vrcp.f32 %v3236_v3  ;;  %v3295_v24 = vor.u32 1.1754944e-38, %v1258_v61 }
 0x16b   : > { %v910_v60 = vadd.f32 %v909_v21, %v3166_v62  ;;  %v1243_v22 = vand.u32 2147483648, %v3149_v9  ;;  %v1320_v62 = vand.u32 2147483648, %v3164_v57  ;;  %v1180_v11 = vsel %vm3276_vm8, %v3090_v53, %v1176_v38 }
 0x16c   : > { %v1968_v2 = vmul.f32 -1.442695, %v814_v55  ;;  %2196 = vrcp.f32 %v3266_v47  ;;  %v1225_v55 = vsel %vm3290_vm9, %v3101_v7, %v1221_v46  ;;  %v1206_v36 = vadd.f32 %v3153_v4, %v1205_v43 }
 0x16d   : > { %v3284_v50 = vpop.eup %2188  ;;  %v1249_v35 = vsub.f32 1.0, %v1248_v16  ;;  %v1234_v49 = vsub.f32 1.0, %v1233_v52  ;;  %v1273_v15 = vand.u32 2147483648, %v3236_v3  ;;  %v1311_v28 = vsub.f32 1.0, %v1310_v59 }
 0x16e   : > { %v2191_v10 = vpop.eup %2190  ;;  %2198 = vpow2.f32 %v1968_v2  ;;  %v959_v53 = vadd.f32 %v3185_v25, %v910_v60  ;;  %v3313_v38 = vor.u32 1.1754944e-38, %v1243_v22  ;;  %v1185_v7 = vsel %vm3243_vm4, %v3142_v0, %v1180_v11 }
 0x16f   : > { %v767_v21 = vpop.f32.mrf.mxu1  ;;  %v2193_v61 = vpop.eup %2192  ;;  %v3308_v42 = vadd.f32 1.0, %v2191_v10  ;;  %v1230_v43 = vsel %vm3254_vm7, %v3199_v17, %v1225_v55  ;;  %vm3321_vm11 = vcmp.eq.f32.partialorder %v1211_v40, 8.507059e+37  ;;  %vm1314_vm13 = vweird.f32 %v3164_v57  ;;  %v1438_v40 = vld [vmem:[%s3190_s22 + $0x8] sm:$0xff]  ;;  %v1441_v10 = vld [vmem:[%s3190_s22 + $0x20] sm:$0xff] }
 0x170   : > { %v3310_v1 = vadd.f32 1.0, %v2193_v61  ;;  %v3325_v16 = vpop.eup %2194  ;;  %v1318_v0 = vand.u32 2147483647, %v3164_v57  ;;  %v1340_v17 = vmul.f32 %v3284_v50, %v3219_v39  ;;  %v3343_v8 = vor.u32 1.1754944e-38, %v1320_v62  ;;  %v865_v52 = vpop.f32.mrf.mxu3 }
 0x171   : > { %2200 = vrcp.f32 %v3308_v42  ;;  %v1967_v12 = vmul.f32 -1.442695, %v959_v53  ;;  %v1210_v59 = vsel %vm3331_vm12, %v3153_v4, %v1206_v36  ;;  %v1250_v2 = vmul.f32 %v3226_v6, %v1249_v35  ;;  %v3360_v61 = vpop.f32.mrf.mxu0 }
 0x172   : > { %v911_v56 = vpop.f32.mrf.mxu2  ;;  %v3341_v30 = vpop.eup %2196  ;;  %2202 = vrcp.f32 %v3310_v1  ;;  %v3351_v60 = vmul.f32 %v3234_v41, %v1234_v49  ;;  %v1312_v19 = vmul.f32 %v3247_v63, %v1311_v28  ;;  %v3354_v22 = vor.u32 1.1754944e-38, %v1273_v15 }
 0x173   : > { %v1350_v62 = vand.u32 2147483648, %v3219_v39  ;;  %v768_v11 = vadd.f32 %v767_v21, %v2801_v27  ;;  %v912_v55 = vadd.f32 %v911_v56, %v3252_v23  ;;  %v3362_v36 = vmul.f32 %v1438_v40, %v1185_v7  ;;  %v1440_v23 = vld [vmem:[%s3190_s22 + $0x18] sm:$0xff] }
 0x174   : > { %3865 = vst [vmem:[#allocation17_spill] sm:$0xff] %v3354_v22  ;;  %v2199_v35 = vpop.eup %2198  ;;  %vm3364_vm14 = vcmp.eq.f32.partialorder %v1318_v0, 8.507059e+37  ;;  %v1263_v15 = vmul.f32 %v3325_v16, %v3236_v3  ;;  %v1341_v49 = vsub.f32 1.0, %v1340_v17  ;;  %v1325_v28 = vmul.f32 %v3341_v30, %v3266_v47 }
 0x175   : > { %v1215_v27 = vsel %vm3321_vm11, %v3228_v29, %v1210_v59  ;;  %vm1315_vm15 = vweird.f32 %v3247_v63  ;;  %2204 = vpow2.f32 %v1967_v12  ;;  %v817_v21 = vadd.f32 %v2776_v14, %v768_v11 }
 0x176   : > { %v3378_v56 = vmul.f32 %v1441_v10, %v1230_v43  ;;  %v1313_v25 = vadd.f32 %v3247_v63, %v1312_v19  ;;  %vm1344_vm0 = vweird.f32 %v3219_v39  ;;  %v961_v0 = vadd.f32 %v3268_v54, %v912_v55  ;;  %vm3404_vm2 = vmor %vm1314_vm13, %vm1315_vm15 }
 0x177   : > { %v769_v53 = vpop.f32.mrf.mxu1  ;;  %v3380_v7 = vpop.eup %2200  ;;  %v1348_v29 = vand.u32 2147483647, %v3219_v39  ;;  %v3389_v40 = vor.u32 1.1754944e-38, %v1350_v62  ;;  %v3391_v12 = vadd.f32 1.0, %v2199_v35  ;;  %v3393_v43 = vmul.f32 %v1440_v23, %v1215_v27 }
 0x178   : > { %v770_v17 = vadd.f32 %v769_v53, %v2811_v33  ;;  %v3386_v46 = vpop.eup %2202  ;;  %vm1253_vm1 = vweird.f32 %v3226_v6  ;;  %v1264_v59 = vsub.f32 1.0, %v1263_v15  ;;  %v1342_v19 = vmul.f32 %v3284_v50, %v1341_v49 }
 0x179   : > { %v1326_v10 = vsub.f32 1.0, %v1325_v28  ;;  %v3398_v54 = vadd.f32 %v3226_v6, %v1250_v2  ;;  %v1335_v62 = vand.u32 2147483648, %v3266_v47  ;;  %v1370_v11 = vmul.f32 %v3380_v7, %v3308_v42  ;;  %v965_v33 = vpop.f32.mrf.mxu0 }
 0x17a   : > { %v914_v14 = vpop.f32.mrf.mxu2  ;;  %2206 = vtanh.f32 %v817_v21  ;;  %v819_v55 = vadd.f32 %v2784_v20, %v770_v17  ;;  %vm1252_vm3 = vweird.f32 %v3144_v34  ;;  %v1317_v2 = vsel %vm3404_vm2, %v3247_v63, %v1313_v25  ;;  %v867_v63 = vpop.f32.mrf.mxu3 }
 0x17b   : > { %v1355_v57 = vmul.f32 %v3386_v46, %v3310_v1  ;;  %v1969_v35 = vmul.f32 -1.442695, %v961_v0  ;;  %v2205_v49 = vpop.eup %2204  ;;  %vm1345_vm4 = vweird.f32 %v3284_v50  ;;  %vm3420_vm5 = vcmp.eq.f32.partialorder %v1348_v29, 8.507059e+37  ;;  %vm3481_vm13 = vmor %vm1252_vm3, %vm1253_vm1 }
 0x17c   : > { %vm1329_vm6 = vweird.f32 %v3266_v47  ;;  %v1333_v20 = vand.u32 2147483647, %v3266_v47  ;;  %2208 = vrcp.f32 %v3391_v12  ;;  %v1343_v53 = vadd.f32 %v3284_v50, %v1342_v19  ;;  %vm3447_vm7 = vmor %vm1344_vm0, %vm1345_vm4 }
 0x17d   : > { %v1327_v27 = vmul.f32 %v3341_v30, %v1326_v10  ;;  %2210 = vtanh.f32 %v819_v55  ;;  %v915_v23 = vadd.f32 %v914_v14, %v865_v52  ;;  %v3432_v25 = vsel %vm3364_vm14, %v3343_v8, %v1317_v2 }
 0x17e   : > { %v3435_v0 = vmul.f32 %v3325_v16, %v1264_v59  ;;  %v3437_v17 = vor.u32 1.1754944e-38, %v1335_v62  ;;  %v1371_v29 = vsub.f32 1.0, %v1370_v11  ;;  %v1380_v15 = vand.u32 2147483648, %v3308_v42 }
 0x17f   : > { %v772_v21 = vpop.f32.mrf.mxu1  ;;  %v1356_v19 = vsub.f32 1.0, %v1355_v57  ;;  %v3440_v22 = vadd.f32 1.0, %v2205_v49  ;;  %2212 = vpow2.f32 %v1969_v35  ;;  %vm3451_vm8 = vcmp.eq.f32.partialorder %v1333_v20, 8.507059e+37 }
 0x180   : > { %v2207_v52 = vpop.eup %2206  ;;  %vm1374_vm9 = vweird.f32 %v3308_v42  ;;  %v1378_v14 = vand.u32 2147483647, %v3308_v42  ;;  %v1363_v59 = vand.u32 2147483647, %v3310_v1  ;;  %v1365_v10 = vand.u32 2147483648, %v3310_v1 }
 0x181   : > { %v964_v62 = vadd.f32 %v3360_v61, %v915_v23  ;;  %v1347_v39 = vsel %vm3447_vm7, %v3284_v50, %v1343_v53  ;;  %v1328_v55 = vadd.f32 %v3341_v30, %v1327_v27  ;;  %vm1330_vm10 = vweird.f32 %v3341_v30 }
 0x182   : > { %v916_v11 = vpop.f32.mrf.mxu2  ;;  %vm1359_vm11 = vweird.f32 %v3310_v1  ;;  %v1453_v2 = vmul.f32 %v2207_v52, %v2952_v58  ;;  %v3467_v57 = vpop.eup %2208  ;;  %v1372_v35 = vmul.f32 %v3380_v7, %v1371_v29  ;;  %v773_v61 = vadd.f32 %v772_v21, %v2823_v31  ;;  %vm3503_vm0 = vmor %vm1329_vm6, %vm1330_vm10 }
 0x183   : > { %2214 = vtanh.f32 %v964_v62  ;;  %v917_v49 = vadd.f32 %v916_v11, %v867_v63  ;;  %v2211_v20 = vpop.eup %2210  ;;  %vm1238_vm12 = vweird.f32 %v3234_v41  ;;  %v3472_v50 = vor.u32 1.1754944e-38, %v1380_v15  ;;  %v870_v8 = vpop.f32.mrf.mxu3 }
 0x184   : > { %v1357_v53 = vmul.f32 %v3386_v46, %v1356_v19  ;;  %2216 = vrcp.f32 %v3440_v22  ;;  %v1461_v58 = vadd.f32 %v1453_v2, %v3231_v5  ;;  %vm3485_vm14 = vcmp.eq.f32.partialorder %v1378_v14, 8.507059e+37  ;;  %v968_v62 = vpop.f32.mrf.mxu0 }
 0x185   : > { %v3489_v15 = vor.u32 1.1754944e-38, %v1365_v10  ;;  %v1455_v63 = vmul.f32 %v2211_v20, %v2999_v18  ;;  %v822_v23 = vadd.f32 %v2799_v45, %v773_v61  ;;  %v966_v21 = vadd.f32 %v965_v33, %v917_v49  ;;  %v2213_v5 = vpop.eup %2212 }
 0x186   : > { %vm1237_vm15 = vweird.f32 %v3149_v9  ;;  %v3497_v29 = vsel %vm3420_vm5, %v3389_v40, %v1347_v39  ;;  %vm3507_vm1 = vcmp.eq.f32.partialorder %v1363_v59, 8.507059e+37  ;;  %2218 = vtanh.f32 %v1461_v58  ;;  %1493 = vst [vmem:[%s3513_s29] sm:$0xff] %v1461_v58 }
 0x187   : > { %v1255_v45 = vsel %vm3481_vm13, %v3226_v6, %v3398_v54  ;;  %v3884_v47 = vand.u32 2147483647, %v3144_v34  ;;  %v1332_v28 = vsel %vm3503_vm0, %v3341_v30, %v1328_v55  ;;  %v1373_v33 = vadd.f32 %v3380_v7, %v1372_v35  ;;  %v774_v14 = vpop.f32.mrf.mxu1  ;;  %vm3598_vm10 = vmor %vm1237_vm15, %vm1238_vm12 }
 0x188   : > { %vm1375_vm3 = vweird.f32 %v3380_v7  ;;  %v1400_v52 = vmul.f32 %v3467_v57, %v3391_v12  ;;  %vm1086_vm4 = vweird.f32 %v3015_v13  ;;  %v1358_v34 = vadd.f32 %v3386_v46, %v1357_v53 }
 0x189   : > { %vm3522_vm2 = vcmp.eq.f32.partialorder %v3884_v47, 8.507059e+37  ;;  %vm1360_vm5 = vweird.f32 %v3386_v46  ;;  %v1463_v6 = vadd.f32 %v1455_v63, %v3270_v48  ;;  %2220 = vtanh.f32 %v822_v23  ;;  %v2215_v30 = vpop.eup %2214  ;;  %vm3553_vm7 = vmor %vm1374_vm9, %vm1375_vm3  ;;  %v1443_v63 = vld [vmem:[%s3190_s22 + $0x30] sm:$0xff] }
 0x18a   : > { %v1408_v54 = vand.u32 2147483647, %v3391_v12  ;;  %v1410_v59 = vand.u32 2147483648, %v3391_v12  ;;  %v3539_v10 = vadd.f32 1.0, %v2213_v5  ;;  %2222 = vtanh.f32 %v966_v21  ;;  %v919_v11 = vpop.f32.mrf.mxu2  ;;  %v3542_v39 = vpop.eup %2216  ;;  %v3893_v21 = vld [vmem:[#allocation14_spill] sm:$0xff] }
 0x18b   : > { %vm1085_vm6 = vweird.f32 %v2929_v26  ;;  %v3547_v55 = vsel %vm3451_vm8, %v3437_v17, %v1332_v28  ;;  %2224 = vtanh.f32 %v1463_v6  ;;  %1495 = vst [vmem:[%s3513_s29 + $0x10] sm:$0xff] %v1463_v6  ;;  %v1454_v2 = vmul.f32 %v2215_v30, %v3011_v37  ;;  %vm3567_vm8 = vmor %vm1359_vm11, %vm1360_vm5  ;;  %v872_v47 = vpop.f32.mrf.mxu3  ;;  %v3897_v6 = vld [vmem:[#allocation13_spill] sm:$0xff] }
 0x18c   : > { %v775_v35 = vadd.f32 %v774_v14, %v2831_v44  ;;  %v1377_v4 = vsel %vm3553_vm7, %v3380_v7, %v1373_v33  ;;  %v1401_v17 = vsub.f32 1.0, %v1400_v52  ;;  %v1260_v61 = vsel %vm3522_vm2, %v3295_v24, %v1255_v45  ;;  %v2219_v44 = vpop.eup %2218  ;;  %vm3630_vm13 = vmor %vm1085_vm6, %vm1086_vm4  ;;  %v1442_v14 = vld [vmem:[%s3190_s22 + $0x28] sm:$0xff] }
 0x18d   : > { %v920_v37 = vadd.f32 %v919_v11, %v870_v8  ;;  %v1362_v7 = vsel %vm3567_vm8, %v3386_v46, %v1358_v34  ;;  %v1462_v49 = vadd.f32 %v1454_v2, %v3362_v36  ;;  %v1236_v20 = vadd.f32 %v3234_v41, %v3351_v60  ;;  %v970_v34 = vpop.f32.mrf.mxu0 }
 0x18e   : > { %v824_v1 = vadd.f32 %v2809_v32, %v775_v35  ;;  %vm1268_vm9 = vweird.f32 %v3325_v16  ;;  %v1385_v24 = vmul.f32 %v3542_v39, %v3440_v22  ;;  %v1477_v53 = vmul.f32 %v2219_v44, %v3432_v25  ;;  %v3900_v44 = vld [vmem:[#allocation15_spill] sm:$0xff] }
 0x18f   : > { %2226 = vrcp.f32 %v3539_v10  ;;  %v969_v58 = vadd.f32 %v968_v62, %v920_v37  ;;  %v2221_v46 = vpop.eup %2220  ;;  %v3589_v32 = vsel %vm3485_vm14, %v3472_v50, %v1377_v4  ;;  %v1395_v60 = vand.u32 2147483648, %v3440_v22  ;;  %1494 = vst [vmem:[%s3513_s29 + $0x8] sm:$0xff] %v1462_v49  ;;  %v3899_v62 = vld [vmem:[#allocation12_spill] sm:$0xff] }
 0x190   : > { %2228 = vtanh.f32 %v1462_v49  ;;  %v1241_v36 = vand.u32 2147483647, %v3149_v9  ;;  %v2223_v27 = vpop.eup %2222  ;;  %vm1267_vm11 = vweird.f32 %v3236_v3  ;;  %v3606_v50 = vsel %vm3507_vm1, %v3489_v15, %v1362_v7  ;;  %1485 = vst [vmem:[%s3611_s5] sm:$0xff] %v1477_v53 }
 0x191   : > { %v1402_v31 = vmul.f32 %v3467_v57, %v1401_v17  ;;  %v1457_v9 = vmul.f32 %v2221_v46, %v3079_v51  ;;  %2230 = vtanh.f32 %v824_v1  ;;  %v2225_v23 = vpop.eup %2224  ;;  %v1456_v5 = vmul.f32 %v2223_v27, %v3893_v21  ;;  %vm3667_vm2 = vmor %vm1267_vm11, %vm1268_vm9 }
 0x192   : > { %v1091_v19 = vand.u32 2147483648, %v2929_v26  ;;  %v1240_v15 = vsel %vm3598_vm10, %v3234_v41, %v1236_v20  ;;  %2232 = vtanh.f32 %v969_v58  ;;  %vm1405_vm12 = vweird.f32 %v3467_v57  ;;  %v921_v28 = vpop.f32.mrf.mxu2  ;;  %v3903_v58 = vld [vmem:[#allocation11_spill] sm:$0xff] }
 0x193   : > { %v1386_v18 = vsub.f32 1.0, %v1385_v24  ;;  %v1479_v45 = vmul.f32 %v2225_v23, %v3497_v29  ;;  %v1465_v51 = vadd.f32 %v1457_v9, %v3378_v56  ;;  %v1089_v40 = vand.u32 2147483647, %v2929_v26  ;;  %v3896_v56 = vld [vmem:[#allocation16_spill] sm:$0xff] }
 0x194   : > { %v1464_v33 = vadd.f32 %v1456_v5, %v3393_v43  ;;  %v1451_v52 = vmul.f32 %v1443_v63, %v1260_v61  ;;  %vm1242_vm14 = vcmp.eq.f32.partialorder %v1241_v36, 8.507059e+37  ;;  %v922_v29 = vadd.f32 %v921_v28, %v872_v47 }
 0x195   : > { %v3634_v8 = vpop.eup %2226  ;;  %vm1404_vm15 = vweird.f32 %v3391_v12  ;;  %1487 = vst [vmem:[%s3611_s5 + $0x10] sm:$0xff] %v1479_v45  ;;  %2234 = vtanh.f32 %v1465_v51  ;;  %v1088_v43 = vsel %vm3630_vm13, %v3015_v13, %v3896_v56  ;;  %v1245_v26 = vsel %vm1242_vm14, %v3313_v38, %v1240_v15  ;;  %v3908_v15 = vld [vmem:[#allocation17_spill] sm:$0xff]  ;;  %v1444_v45 = vld [vmem:[%s3190_s22 + $0x38] sm:$0xff] }
 0x196   : > { %v3898_v30 = vsub.f32 1.0, %v3897_v6  ;;  %v2229_v48 = vpop.eup %2228  ;;  %v3648_v2 = vadd.f32 %v3467_v57, %v1402_v31  ;;  %1497 = vst [vmem:[%s3513_s29 + $0x20] sm:$0xff] %v1465_v51  ;;  %2236 = vtanh.f32 %v1464_v33  ;;  %v1092_v35 = vor.u32 1.1754944e-38, %v1091_v19  ;;  %vm3697_vm7 = vmor %vm1404_vm15, %vm1405_vm12 }
 0x197   : > { %v971_v4 = vadd.f32 %v970_v34, %v922_v29  ;;  %v2231_v42 = vpop.eup %2230  ;;  %v1387_v13 = vmul.f32 %v3542_v39, %v1386_v18  ;;  %v1478_v38 = vmul.f32 %v2229_v48, %v3547_v55  ;;  %1496 = vst [vmem:[%s3513_s29 + $0x18] sm:$0xff] %v1464_v33  ;;  %vm1090_vm0 = vcmp.eq.f32.partialorder %v1089_v40, 8.507059e+37 }
 0x198   : > { %v1113_v11 = vmul.f32 %v3899_v62, %v3898_v30  ;;  %v1266_v17 = vadd.f32 %v3325_v16, %v3435_v0  ;;  %v2233_v61 = vpop.eup %2232  ;;  %v1415_v37 = vmul.f32 %v3634_v8, %v3539_v10  ;;  %v1459_v7 = vmul.f32 %v2231_v42, %v3900_v44 }
 0x199   : > { %v1093_v49 = vsel %vm1090_vm0, %v1092_v35, %v1088_v43  ;;  %v1450_v1 = vmul.f32 %v1442_v14, %v1245_v26  ;;  %1486 = vst [vmem:[%s3611_s5 + $0x8] sm:$0xff] %v1478_v38  ;;  %vm1116_vm1 = vweird.f32 %v3899_v62  ;;  %v1271_v55 = vand.u32 2147483647, %v3236_v3 }
 0x19a   : > { %v1458_v20 = vmul.f32 %v2233_v61, %v1093_v49  ;;  %v1114_v24 = vadd.f32 %v3899_v62, %v1113_v11  ;;  %vm1390_vm3 = vweird.f32 %v3542_v39  ;;  %v1467_v53 = vadd.f32 %v1459_v7, %v1451_v52 }
 0x19b   : > { %v1121_v46 = vand.u32 2147483648, %v3903_v58  ;;  %2238 = vtanh.f32 %v971_v4  ;;  %v2235_v36 = vpop.eup %2234  ;;  %vm1115_vm4 = vweird.f32 %v3903_v58  ;;  %v1119_v25 = vand.u32 2147483647, %v3903_v58 }
 0x19c   : > { %v1466_v27 = vadd.f32 %v1458_v20, %v1450_v1  ;;  %v1270_v3 = vsel %vm3667_vm2, %v3325_v16, %v1266_v17  ;;  %v2237_v31 = vpop.eup %2236  ;;  %v1388_v9 = vadd.f32 %v3542_v39, %v1387_v13  ;;  %v1416_v63 = vsub.f32 1.0, %v1415_v37  ;;  %1499 = vst [vmem:[%s3513_s29 + $0x30] sm:$0xff] %v1467_v53  ;;  %vm3683_vm5 = vmor %vm1115_vm4, %vm1116_vm1 }
 0x19d   : > { %v1481_v23 = vmul.f32 %v2235_v36, %v3589_v32  ;;  %2240 = vtanh.f32 %v1467_v53  ;;  %v1480_v16 = vmul.f32 %v2237_v31, %v3606_v50  ;;  %v1118_v32 = vsel %vm3683_vm5, %v3899_v62, %v1114_v24 }
 0x19e   : > { %2242 = vtanh.f32 %v1466_v27  ;;  %1498 = vst [vmem:[%s3513_s29 + $0x28] sm:$0xff] %v1466_v27  ;;  %vm1272_vm6 = vcmp.eq.f32.partialorder %v1271_v55, 8.507059e+37  ;;  %vm1389_vm8 = vweird.f32 %v3440_v22  ;;  %v1393_v50 = vand.u32 2147483647, %v3440_v22 }
 0x19f   : > { %1489 = vst [vmem:[%s3611_s5 + $0x20] sm:$0xff] %v1481_v23  ;;  %v1122_v19 = vor.u32 1.1754944e-38, %v1121_v46  ;;  %v1275_v18 = vsel %vm1272_vm6, %v3908_v15, %v1270_v3  ;;  %v1407_v51 = vsel %vm3697_vm7, %v3467_v57, %v3648_v2  ;;  %vm3712_vm9 = vmor %vm1389_vm8, %vm1390_vm3  ;;  %vm1120_vm10 = vcmp.eq.f32.partialorder %v1119_v25, 8.507059e+37 }
 0x1a0   : > { %1488 = vst [vmem:[%s3611_s5 + $0x18] sm:$0xff] %v1480_v16  ;;  %v1411_v28 = vor.u32 1.1754944e-38, %v1410_v59  ;;  %v1392_v57 = vsel %vm3712_vm9, %v3542_v39, %v1388_v9  ;;  %v1417_v33 = vmul.f32 %v3634_v8, %v1416_v63  ;;  %vm1409_vm11 = vcmp.eq.f32.partialorder %v1408_v54, 8.507059e+37 }
 0x1a1   : > { %v2239_v40 = vpop.eup %2238  ;;  %v1123_v52 = vsel %vm1120_vm10, %v1122_v19, %v1118_v32  ;;  %v1396_v41 = vor.u32 1.1754944e-38, %v1395_v60  ;;  %v1452_v29 = vmul.f32 %v1444_v45, %v1275_v18  ;;  %vm1394_vm12 = vcmp.eq.f32.partialorder %v1393_v50, 8.507059e+37 }
 0x1a2   : > { %v1460_v56 = vmul.f32 %v2239_v40, %v1123_v52  ;;  %v1412_v26 = vsel %vm1409_vm11, %v1411_v28, %v1407_v51  ;;  %v1418_v12 = vadd.f32 %v3634_v8, %v1417_v33  ;;  %vm1420_vm13 = vweird.f32 %v3634_v8 }
 0x1a3   : > { %v2241_v43 = vpop.eup %2240  ;;  %v1397_v39 = vsel %vm1394_vm12, %v1396_v41, %v1392_v57  ;;  %v1425_v54 = vand.u32 2147483648, %v3539_v10  ;;  %vm1419_vm14 = vweird.f32 %v3539_v10  ;;  %v1423_v60 = vand.u32 2147483647, %v3539_v10 }
 0x1a4   : > { %v2243_v59 = vpop.eup %2242  ;;  %v1483_v14 = vmul.f32 %v2241_v43, %v1412_v26  ;;  %v1468_v34 = vadd.f32 %v1460_v56, %v1452_v29  ;;  %vm3745_vm15 = vmor %vm1419_vm14, %vm1420_vm13 }
 0x1a5   : > { %v1482_v22 = vmul.f32 %v2243_v59, %v1397_v39  ;;  %v1422_v30 = vsel %vm3745_vm15, %v3634_v8, %v1418_v12 }
 0x1a6   : > { %1491 = vst [vmem:[%s3611_s5 + $0x30] sm:$0xff] %v1483_v14  ;;  %2244 = vtanh.f32 %v1468_v34 }
 0x1a7   : > { %1490 = vst [vmem:[%s3611_s5 + $0x28] sm:$0xff] %v1482_v22 }
 0x1a8   : > { %1500 = vst [vmem:[%s3513_s29 + $0x38] sm:$0xff] %v1468_v34 }
 0x1a9   : > { %2303 = shalt.err (!%p2300_p8)
}
 0x1aa   : > { %s2378_s29 = smov 256   ;;  %s2379_s30 = smov 16   ;;  %v1426_v10 = vor.u32 1.1754944e-38, %v1425_v54  ;;  %vm1424_vm0 = vcmp.eq.f32.partialorder %v1423_v60, 8.507059e+37 }
 0x1ab   : > { %2066 = dma.vmem_to_hbm [thread:$0]  (%p2451_p11), %s1537_s10, 1024, %s1539_s25, %s1507_s12, %s2378_s29, %s2378_s29, %s2379_s30  }
 0x1ac   : > { %s1519_s7 = sshll.u32 %s3611_s5, 4  ;;  %s1521_s8 = sshll.u32 %s1518_s11, 4  ;;  %v2245_v8 = vpop.eup %2244  ;;  %v1427_v62 = vsel %vm1424_vm0, %v1426_v10, %v1422_v30  ;;  %s1520_s7 = int_to_ptr.vmem [resolvable:$true] %s1519_s7  ;;  %s1522_s8 = int_to_ptr.hbm [resolvable:$true] %s1521_s8 }
 0x1ad   : > { %v1484_v11 = vmul.f32 %v2245_v8, %v1427_v62  ;;  %s1502_s9 = scalar_lea.sflag [#allocation4], %s2481_s6  ;;  %s2318_s14 = sshra.s32 %s1522_s8, 4  ;;  %s2319_s14 = int_to_ptr.hbm [resolvable:$true] %s2318_s14 }
 0x1ae   : > { %s2320_s20 = scalar_lea.hbm %s2319_s14, 64  ;;  %s2324_s12 = scalar_lea.hbm %s3804_s3, 128 }
 0x1af   : > { %1492 = vst [vmem:[%s3611_s5 + $0x38] sm:$0xff] %v1484_v11  ;;  %p2321_p10 = scmp.ne.s32.totalorder %s2319_s14, %s2320_s20  ;;  %p2325_p6 = scmp.lt.s32.totalorder %s2319_s14, %s3804_s3 }
 0x1b0   : > { %p2326_p13 = scmp.lt.s32.totalorder %s2324_s12, %s2320_s20 }
 0x1b1   : > { %p2322_p0 = pnand %p2321_p10, %p2451_p11 }
 0x1b2   : > { %p2327_p2 = por %p2326_p13, %p2325_p6 }
 0x1b3   : > { %p2323_p1 = pneg %p2322_p0 }
 0x1b5   : > { %p2328_p3 = pnand %p2327_p2, %p2323_p1 }
 0x1b7   : > { %2331 = shalt.err (!%p2328_p3)
}
 0x1b8   : > { %2065 = dma.vmem_to_hbm [thread:$0]  (%p2451_p11), %s1520_s7, 1024, %s1522_s8, %s1502_s9, %s2378_s29, %s2378_s29, %s2379_s30  }
 0x1b9 PF: > { %s1553_s6 = sand.u32 1, %s2362_s15   ;;  %p2074_p4 = pnand %p1659_p9, %p2455_p12 }
 0x1ba   : > { %s1554_s5 = scalar_lea.sflag [#allocation4], %s1553_s6 }
 0x1bb   : > { %p2075_p5 = pneg %p2074_p4 }
 0x1bd   : > { %2353 = dma.done.wait (%p2075_p5), %s1554_s5, 1024  }
 0x1be   : > { %2355 = vsyncadd (%p2075_p5), %s1554_s5, 4294966272  ;;  %s1564_s22 = scalar_lea.sflag [#allocation7], %s1553_s6 }
 0x1bf   : > { %2357 = dma.done.wait (%p2075_p5), %s1564_s22, 1024  }
 0x1c0   : > { %2359 = vsyncadd (%p2075_p5), %s1564_s22, 4294966272  ;;  %p21_p11 = scmp.ge.s32.totalorder %s2430_s21, 4   ;;  %s3913_s15 = smov %s2366_s16 }
 0x1c1   : > { %s3914_s16 = smov %s2370_s17  ;;  %s3915_s17 = smov %s2442_s24 }
 0x1c2   : > { %s3916_s18 = smov %s2430_s21  ;;  %23 = sbr.rel (!%p21_p11) target bundleno = 7 (0x7), region = 97 }
 0x1c7   :  { %1570 = vsyncpa [#allocation3], 1 }
 0x1c8   :  { %1572 = vsyncpa [#allocation3 + $0x1], 1 }
 0x1c9   :  { %1573 = vsyncpa [#allocation4], 1 }
 0x1ca   :  { %1575 = vsyncpa [#allocation4 + $0x1], 1 }
 0x1cb   :  { %1576 = vsyncpa [#allocation7], 1 }
 0x1cc   :  { %1578 = vsyncpa [#allocation7 + $0x1], 1 }

</bundles_post_ra>
